<compile_context>
chip_gen: v5e
topology: v5e:2x2
jax: 0.10.0
libtpu: 0.0.40
codegen_flags: <defaults>
</compile_context>

<pallas_src>
import math
import functools

import jax
import jax.numpy as jnp
from jax.experimental import pallas as pl
from jax.experimental.pallas import tpu as pltpu


def _gelu_exact(x):
    # PyTorch nn.GELU() default == exact (erf-based) GELU.
    return 0.5 * x * (1.0 + jax.lax.erf(x * (1.0 / math.sqrt(2.0))))


def _predictor_kernel(x_ref, w1_ref, b1_ref, w2_ref, b2_ref,
                      w3_ref, b3_ref, w4_ref, b4_ref, out_ref, *, mxu_dtype):
    x = x_ref[...].astype(jnp.float32)                        # (C, TN)

    # --- LayerNorm over channels (eps=1e-5, biased variance). gamma/beta are
    #     folded into w1/b1 by the wrapper, so only normalization runs here.
    mu = jnp.mean(x, axis=0, keepdims=True)                   # (1, TN)
    xc = x - mu
    var = jnp.mean(xc * xc, axis=0, keepdims=True)
    h = xc * jax.lax.rsqrt(var + 1e-5)                        # (C, TN)

    def lin(w_ref, b_ref, a):
        # y = W @ a + b, with W in (out, in) layout; f32 accumulation.
        return jnp.dot(w_ref[...].astype(mxu_dtype), a.astype(mxu_dtype),
                       preferred_element_type=jnp.float32) + b_ref[...]

    # --- in_conv: Linear(C, C) + GELU (gamma/beta already folded in) ---
    h = _gelu_exact(lin(w1_ref, b1_ref, h))                   # (C,   TN)
    # --- out_conv: Linear(C, C/2) + GELU ---
    h = _gelu_exact(lin(w2_ref, b2_ref, h))                   # (C/2, TN)
    # --- out_conv: Linear(C/2, C/4) + GELU ---
    h = _gelu_exact(lin(w3_ref, b3_ref, h))                   # (C/4, TN)
    # --- out_conv: Linear(C/4, 2) ---
    logits = lin(w4_ref, b4_ref, h)                           # (2,   TN)

    # --- LogSoftmax over the 2 classes, closed form (no lane reductions) ---
    l0 = logits[0:1, :]
    l1 = logits[1:2, :]
    m = jnp.maximum(l0, l1)
    lse = m + jnp.log(jnp.exp(l0 - m) + jnp.exp(l1 - m))      # (1, TN)
    out_ref[...] = (logits - lse).astype(out_ref.dtype)


def init_predictor_params(key, embed_dim):
    """Deterministic synthetic parameters in PyTorch layout: W (out, in), b (out,)."""
    d, d2, d4 = embed_dim, embed_dim // 2, embed_dim // 4
    ks = jax.random.split(key, 10)

    def lin(kw, kb, fan_in, fan_out):
        bound = 1.0 / math.sqrt(fan_in)
        w = jax.random.uniform(kw, (fan_out, fan_in), jnp.float32, -bound, bound)
        b = jax.random.uniform(kb, (fan_out,), jnp.float32, -bound, bound)
        return w, b

    # PyTorch inits gamma=1, beta=0; use non-trivial values here so the
    # gamma/beta -> w1/b1 folding is actually exercised by the check.
    gamma = 1.0 + 0.1 * jax.random.normal(ks[8], (d,), jnp.float32)
    beta = 0.1 * jax.random.normal(ks[9], (d,), jnp.float32)
    w1, b1 = lin(ks[0], ks[1], d, d)
    w2, b2 = lin(ks[2], ks[3], d, d2)
    w3, b3 = lin(ks[4], ks[5], d2, d4)
    w4, b4 = lin(ks[6], ks[7], d4, 2)
    return dict(gamma=gamma, beta=beta, w1=w1, b1=b1, w2=w2, b2=b2,
                w3=w3, b3=b3, w4=w4, b4=b4)


def _fold_params(p):
    """Fold LayerNorm gamma/beta into the first Linear; biases become columns."""
    w1 = (p["w1"] * p["gamma"][None, :]).astype(jnp.float32)     # scale input dim
    b1 = (p["w1"] @ p["beta"] + p["b1"]).astype(jnp.float32)
    col = lambda b: b.astype(jnp.float32)[:, None]               # (out,) -> (out, 1)
    return (w1, col(b1),
            p["w2"].astype(jnp.float32), col(p["b2"]),
            p["w3"].astype(jnp.float32), col(p["b3"]),
            p["w4"].astype(jnp.float32), col(p["b4"]))


def predictor_forward(x, params, H=None, W=None, tn_target=1024):
    """Mirrors Predictor.forward. x is NCHW (4-D) or (B, N, C) (3-D, needs H/W)."""
    assert tn_target % 128 == 0, "token tile target must be 128-aligned"
    if x.ndim == 4:
        B, C, H, W = x.shape
        x_cn = x.reshape(B, C, H * W)                 # free view, stays channel-major
    else:
        assert H is not None and W is not None, "3-D input path requires H and W"
        B, _, C = x.shape
        x_cn = jnp.transpose(x, (0, 2, 1))            # (B, C, N)
    N = x_cn.shape[-1]

    # Token tile on lanes: tn == N (small N) or a 128-multiple; pad the token
    # axis so the grid always divides (no tail asserts).
    if N <= tn_target:
        tn, n_pad = N, N
    else:
        tn = tn_target
        n_pad = pl.cdiv(N, tn) * tn
    if n_pad != N:
        x_cn = jnp.pad(x_cn, ((0, 0), (0, 0), (0, n_pad - N)))
    x_cn = x_cn.astype(jnp.float32)

    folded = _fold_params(params)
    # bf16 MXU operands (f32 accumulation) once the contraction dim is big
    # enough to matter; tiny dims stay f32 (also keeps the check tight).
    mxu_dtype = jnp.bfloat16 if C >= 128 else jnp.float32
    kernel = functools.partial(_predictor_kernel, mxu_dtype=mxu_dtype)

    weight_specs = [pl.BlockSpec(w.shape, lambda b, j: (0, 0)) for w in folded]

    out = pl.pallas_call(
        kernel,
        out_shape=jax.ShapeDtypeStruct((B, 2, n_pad), jnp.float32),
        grid_spec=pltpu.PrefetchScalarGridSpec(
            num_scalar_prefetch=0,
            grid=(B, n_pad // tn),
            in_specs=[pl.BlockSpec((None, C, tn), lambda b, j: (b, 0, j))]
                     + weight_specs,
            out_specs=pl.BlockSpec((None, 2, tn), lambda b, j: (b, 0, j)),
        ),
        compiler_params=pltpu.CompilerParams(
            dimension_semantics=("parallel", "parallel")),
    )(x_cn, *folded)

    if n_pad != N:
        out = out[:, :, :N]
    return out.reshape(B, 2, H, W)


def _reference_forward(x, params):
    """Pure-JAX reference (token-major, unfolded params) for sanity checking."""
    B, C, H, W = x.shape
    t = jnp.transpose(x.reshape(B, C, H * W), (0, 2, 1)).astype(jnp.float32)
    mu = jnp.mean(t, axis=-1, keepdims=True)
    var = jnp.mean((t - mu) ** 2, axis=-1, keepdims=True)
    h = (t - mu) * jax.lax.rsqrt(var + 1e-5) * params["gamma"] + params["beta"]
    h = _gelu_exact(h @ params["w1"].T + params["b1"])
    h = _gelu_exact(h @ params["w2"].T + params["b2"])
    h = _gelu_exact(h @ params["w3"].T + params["b3"])
    logits = h @ params["w4"].T + params["b4"]
    logp = jax.nn.log_softmax(logits, axis=-1)
    return jnp.transpose(logp, (0, 2, 1)).reshape(B, 2, H, W)


if __name__ == "__main__":
    key = jax.random.PRNGKey(0)
    k_x, k_p = jax.random.split(key)

    B, C, H, W = 2, 32, 16, 16          # embed_dim = C = 32, N = 256 tokens
    x = jax.random.normal(k_x, (B, C, H, W), jnp.float32)
    params = init_predictor_params(k_p, embed_dim=C)

    fwd = jax.jit(lambda xx: predictor_forward(xx, params))
    out = jax.block_until_ready(fwd(x))

    ref = _reference_forward(x, params)
    assert out.shape == (B, 2, H, W)
    err = float(jnp.max(jnp.abs(out - ref)))
    assert err < 1e-4, f"mismatch vs reference: max abs err = {err}"

    print("KERNEL_OK")
</pallas_src>

<mosaic_0001>
module attributes {stable_mosaic.version = 11 : i64} {
  func.func @_predictor_kernel(%arg0: i32, %arg1: i32, %arg2: memref<1x32x256xf32, #tpu.memory_space<vmem>>, %arg3: memref<32x32xf32, #tpu.memory_space<vmem>>, %arg4: memref<32x1xf32, #tpu.memory_space<vmem>>, %arg5: memref<16x32xf32, #tpu.memory_space<vmem>>, %arg6: memref<16x1xf32, #tpu.memory_space<vmem>>, %arg7: memref<8x16xf32, #tpu.memory_space<vmem>>, %arg8: memref<8x1xf32, #tpu.memory_space<vmem>>, %arg9: memref<2x8xf32, #tpu.memory_space<vmem>>, %arg10: memref<2x1xf32, #tpu.memory_space<vmem>>, %arg11: memref<1x2x256xf32, #tpu.memory_space<vmem>>) attributes {dimension_semantics = [#tpu.dimension_semantics<parallel>, #tpu.dimension_semantics<parallel>], iteration_bounds = array<i64: 2, 1>, scalar_prefetch = 0 : i64, scratch_operands = 0 : i64, tpu.core_type = #tpu.core_type<tc>, window_params = [{transform_indices = @transform_0, window_bounds = array<i64: 1, 32, 256>}, {pipeline_mode = #tpu.pipeline_mode<synchronous>, transform_indices = @transform_1, window_bounds = array<i64: 32, 32>}, {pipeline_mode = #tpu.pipeline_mode<synchronous>, transform_indices = @transform_2, window_bounds = array<i64: 32, 1>}, {pipeline_mode = #tpu.pipeline_mode<synchronous>, transform_indices = @transform_3, window_bounds = array<i64: 16, 32>}, {pipeline_mode = #tpu.pipeline_mode<synchronous>, transform_indices = @transform_4, window_bounds = array<i64: 16, 1>}, {pipeline_mode = #tpu.pipeline_mode<synchronous>, transform_indices = @transform_5, window_bounds = array<i64: 8, 16>}, {pipeline_mode = #tpu.pipeline_mode<synchronous>, transform_indices = @transform_6, window_bounds = array<i64: 8, 1>}, {pipeline_mode = #tpu.pipeline_mode<synchronous>, transform_indices = @transform_7, window_bounds = array<i64: 2, 8>}, {pipeline_mode = #tpu.pipeline_mode<synchronous>, transform_indices = @transform_8, window_bounds = array<i64: 2, 1>}, {transform_indices = @transform_9, window_bounds = array<i64: 1, 2, 256>}]} {
    %c0 = arith.constant 0 : index
    %c0_0 = arith.constant 0 : index
    %c0_1 = arith.constant 0 : index
    %0 = vector.load %arg2[%c0, %c0_0, %c0_1] : memref<1x32x256xf32, #tpu.memory_space<vmem>>, vector<1x32x256xf32>
    %1 = vector.shape_cast %0 : vector<1x32x256xf32> to vector<32x256xf32>
    %cst = arith.constant dense<0.000000e+00> : vector<256xf32>
    %2 = vector.multi_reduction <add>, %1, %cst [0] : vector<32x256xf32> to vector<256xf32>
    %3 = vector.shape_cast %2 : vector<256xf32> to vector<1x256xf32>
    %cst_2 = arith.constant 3.200000e+01 : f32
    %4 = vector.broadcast %cst_2 : f32 to vector<1x256xf32>
    %5 = arith.divf %3, %4 : vector<1x256xf32>
    %6 = vector.broadcast %5 : vector<1x256xf32> to vector<32x256xf32>
    %7 = arith.subf %1, %6 : vector<32x256xf32>
    %8 = arith.mulf %7, %7 : vector<32x256xf32>
    %cst_3 = arith.constant dense<0.000000e+00> : vector<256xf32>
    %9 = vector.multi_reduction <add>, %8, %cst_3 [0] : vector<32x256xf32> to vector<256xf32>
    %10 = vector.shape_cast %9 : vector<256xf32> to vector<1x256xf32>
    %cst_4 = arith.constant 3.200000e+01 : f32
    %11 = vector.broadcast %cst_4 : f32 to vector<1x256xf32>
    %12 = arith.divf %10, %11 : vector<1x256xf32>
    %cst_5 = arith.constant 9.99999974E-6 : f32
    %13 = vector.broadcast %cst_5 : f32 to vector<1x256xf32>
    %14 = arith.addf %12, %13 : vector<1x256xf32>
    %15 = math.rsqrt %14 : vector<1x256xf32>
    %16 = vector.broadcast %15 : vector<1x256xf32> to vector<32x256xf32>
    %17 = arith.mulf %7, %16 : vector<32x256xf32>
    %c0_6 = arith.constant 0 : index
    %c0_7 = arith.constant 0 : index
    %18 = vector.load %arg3[%c0_6, %c0_7] : memref<32x32xf32, #tpu.memory_space<vmem>>, vector<32x32xf32>
    %cst_8 = arith.constant dense<0.000000e+00> : vector<32x256xf32>
    %19 = tpu.matmul %18, %17, %cst_8 {dimension_numbers = #tpu.dot_dimension_numbers<[1], [0], [0], [1], [0, 0, 1, 1], [], []>} : vector<32x32xf32>, vector<32x256xf32>, vector<32x256xf32> -> vector<32x256xf32>
    %c0_9 = arith.constant 0 : index
    %c0_10 = arith.constant 0 : index
    %20 = vector.load %arg4[%c0_9, %c0_10] : memref<32x1xf32, #tpu.memory_space<vmem>>, vector<32x1xf32>
    %21 = vector.broadcast %20 : vector<32x1xf32> to vector<32x256xf32>
    %22 = arith.addf %19, %21 : vector<32x256xf32>
    %cst_11 = arith.constant 5.000000e-01 : f32
    %23 = vector.broadcast %cst_11 : f32 to vector<32x256xf32>
    %24 = arith.mulf %23, %22 : vector<32x256xf32>
    %cst_12 = arith.constant 0.707106769 : f32
    %25 = vector.broadcast %cst_12 : f32 to vector<32x256xf32>
    %26 = arith.mulf %22, %25 : vector<32x256xf32>
    %27 = math.erf %26 : vector<32x256xf32>
    %cst_13 = arith.constant 1.000000e+00 : f32
    %28 = vector.broadcast %cst_13 : f32 to vector<32x256xf32>
    %29 = arith.addf %28, %27 : vector<32x256xf32>
    %30 = arith.mulf %24, %29 : vector<32x256xf32>
    %c0_14 = arith.constant 0 : index
    %c0_15 = arith.constant 0 : index
    %31 = vector.load %arg5[%c0_14, %c0_15] : memref<16x32xf32, #tpu.memory_space<vmem>>, vector<16x32xf32>
    %cst_16 = arith.constant dense<0.000000e+00> : vector<16x256xf32>
    %32 = tpu.matmul %31, %30, %cst_16 {dimension_numbers = #tpu.dot_dimension_numbers<[1], [0], [0], [1], [0, 0, 1, 1], [], []>} : vector<16x32xf32>, vector<32x256xf32>, vector<16x256xf32> -> vector<16x256xf32>
    %c0_17 = arith.constant 0 : index
    %c0_18 = arith.constant 0 : index
    %33 = vector.load %arg6[%c0_17, %c0_18] : memref<16x1xf32, #tpu.memory_space<vmem>>, vector<16x1xf32>
    %34 = vector.broadcast %33 : vector<16x1xf32> to vector<16x256xf32>
    %35 = arith.addf %32, %34 : vector<16x256xf32>
    %cst_19 = arith.constant 5.000000e-01 : f32
    %36 = vector.broadcast %cst_19 : f32 to vector<16x256xf32>
    %37 = arith.mulf %36, %35 : vector<16x256xf32>
    %cst_20 = arith.constant 0.707106769 : f32
    %38 = vector.broadcast %cst_20 : f32 to vector<16x256xf32>
    %39 = arith.mulf %35, %38 : vector<16x256xf32>
    %40 = math.erf %39 : vector<16x256xf32>
    %cst_21 = arith.constant 1.000000e+00 : f32
    %41 = vector.broadcast %cst_21 : f32 to vector<16x256xf32>
    %42 = arith.addf %41, %40 : vector<16x256xf32>
    %43 = arith.mulf %37, %42 : vector<16x256xf32>
    %c0_22 = arith.constant 0 : index
    %c0_23 = arith.constant 0 : index
    %44 = vector.load %arg7[%c0_22, %c0_23] : memref<8x16xf32, #tpu.memory_space<vmem>>, vector<8x16xf32>
    %cst_24 = arith.constant dense<0.000000e+00> : vector<8x256xf32>
    %45 = tpu.matmul %44, %43, %cst_24 {dimension_numbers = #tpu.dot_dimension_numbers<[1], [0], [0], [1], [0, 0, 1, 1], [], []>} : vector<8x16xf32>, vector<16x256xf32>, vector<8x256xf32> -> vector<8x256xf32>
    %c0_25 = arith.constant 0 : index
    %c0_26 = arith.constant 0 : index
    %46 = vector.load %arg8[%c0_25, %c0_26] : memref<8x1xf32, #tpu.memory_space<vmem>>, vector<8x1xf32>
    %47 = vector.broadcast %46 : vector<8x1xf32> to vector<8x256xf32>
    %48 = arith.addf %45, %47 : vector<8x256xf32>
    %cst_27 = arith.constant 5.000000e-01 : f32
    %49 = vector.broadcast %cst_27 : f32 to vector<8x256xf32>
    %50 = arith.mulf %49, %48 : vector<8x256xf32>
    %cst_28 = arith.constant 0.707106769 : f32
    %51 = vector.broadcast %cst_28 : f32 to vector<8x256xf32>
    %52 = arith.mulf %48, %51 : vector<8x256xf32>
    %53 = math.erf %52 : vector<8x256xf32>
    %cst_29 = arith.constant 1.000000e+00 : f32
    %54 = vector.broadcast %cst_29 : f32 to vector<8x256xf32>
    %55 = arith.addf %54, %53 : vector<8x256xf32>
    %56 = arith.mulf %50, %55 : vector<8x256xf32>
    %c0_30 = arith.constant 0 : index
    %c0_31 = arith.constant 0 : index
    %57 = vector.load %arg9[%c0_30, %c0_31] : memref<2x8xf32, #tpu.memory_space<vmem>>, vector<2x8xf32>
    %cst_32 = arith.constant dense<0.000000e+00> : vector<2x256xf32>
    %58 = tpu.matmul %57, %56, %cst_32 {dimension_numbers = #tpu.dot_dimension_numbers<[1], [0], [0], [1], [0, 0, 1, 1], [], []>} : vector<2x8xf32>, vector<8x256xf32>, vector<2x256xf32> -> vector<2x256xf32>
    %c0_33 = arith.constant 0 : index
    %c0_34 = arith.constant 0 : index
    %59 = vector.load %arg10[%c0_33, %c0_34] : memref<2x1xf32, #tpu.memory_space<vmem>>, vector<2x1xf32>
    %60 = vector.broadcast %59 : vector<2x1xf32> to vector<2x256xf32>
    %61 = arith.addf %58, %60 : vector<2x256xf32>
    %62 = vector.extract_strided_slice %61 {offsets = [0, 0], sizes = [1, 256], strides = [1, 1]} : vector<2x256xf32> to vector<1x256xf32>
    %63 = vector.extract_strided_slice %61 {offsets = [1, 0], sizes = [1, 256], strides = [1, 1]} : vector<2x256xf32> to vector<1x256xf32>
    %64 = arith.maximumf %62, %63 : vector<1x256xf32>
    %65 = arith.subf %62, %64 : vector<1x256xf32>
    %66 = math.exp %65 : vector<1x256xf32>
    %67 = arith.subf %63, %64 : vector<1x256xf32>
    %68 = math.exp %67 : vector<1x256xf32>
    %69 = arith.addf %66, %68 : vector<1x256xf32>
    %70 = math.log %69 : vector<1x256xf32>
    %71 = arith.addf %64, %70 : vector<1x256xf32>
    %72 = vector.broadcast %71 : vector<1x256xf32> to vector<2x256xf32>
    %73 = arith.subf %61, %72 : vector<2x256xf32>
    %c0_35 = arith.constant 0 : index
    %c0_36 = arith.constant 0 : index
    %c0_37 = arith.constant 0 : index
    %74 = vector.load %arg11[%c0_35, %c0_36, %c0_37] : memref<1x2x256xf32, #tpu.memory_space<vmem>>, vector<1x2x256xf32>
    %75 = vector.shape_cast %74 : vector<1x2x256xf32> to vector<2x256xf32>
    %76 = vector.shape_cast %73 : vector<2x256xf32> to vector<1x2x256xf32>
    tpu.vector_store %arg11[%c0_35, %c0_36, %c0_37], %76 {strides = array<i32>} : memref<1x2x256xf32, #tpu.memory_space<vmem>>, vector<1x2x256xf32>,
    return
  }
  func.func @transform_0(%arg0: i32, %arg1: i32) -> (i32, i32, i32) {
    %c0_i32 = arith.constant 0 : i32
    %c0_i32_0 = arith.constant 0 : i32
    return %arg0, %c0_i32, %arg1 : i32, i32, i32
  }
  func.func @transform_1(%arg0: i32, %arg1: i32) -> (i32, i32) {
    %c0_i32 = arith.constant 0 : i32
    %c0_i32_0 = arith.constant 0 : i32
    %c0_i32_1 = arith.constant 0 : i32
    return %c0_i32, %c0_i32_0 : i32, i32
  }
  func.func @transform_2(%arg0: i32, %arg1: i32) -> (i32, i32) {
    %c0_i32 = arith.constant 0 : i32
    %c0_i32_0 = arith.constant 0 : i32
    %c0_i32_1 = arith.constant 0 : i32
    return %c0_i32, %c0_i32_0 : i32, i32
  }
  func.func @transform_3(%arg0: i32, %arg1: i32) -> (i32, i32) {
    %c0_i32 = arith.constant 0 : i32
    %c0_i32_0 = arith.constant 0 : i32
    %c0_i32_1 = arith.constant 0 : i32
    return %c0_i32, %c0_i32_0 : i32, i32
  }
  func.func @transform_4(%arg0: i32, %arg1: i32) -> (i32, i32) {
    %c0_i32 = arith.constant 0 : i32
    %c0_i32_0 = arith.constant 0 : i32
    %c0_i32_1 = arith.constant 0 : i32
    return %c0_i32, %c0_i32_0 : i32, i32
  }
  func.func @transform_5(%arg0: i32, %arg1: i32) -> (i32, i32) {
    %c0_i32 = arith.constant 0 : i32
    %c0_i32_0 = arith.constant 0 : i32
    %c0_i32_1 = arith.constant 0 : i32
    return %c0_i32, %c0_i32_0 : i32, i32
  }
  func.func @transform_6(%arg0: i32, %arg1: i32) -> (i32, i32) {
    %c0_i32 = arith.constant 0 : i32
    %c0_i32_0 = arith.constant 0 : i32
    %c0_i32_1 = arith.constant 0 : i32
    return %c0_i32, %c0_i32_0 : i32, i32
  }
  func.func @transform_7(%arg0: i32, %arg1: i32) -> (i32, i32) {
    %c0_i32 = arith.constant 0 : i32
    %c0_i32_0 = arith.constant 0 : i32
    %c0_i32_1 = arith.constant 0 : i32
    return %c0_i32, %c0_i32_0 : i32, i32
  }
  func.func @transform_8(%arg0: i32, %arg1: i32) -> (i32, i32) {
    %c0_i32 = arith.constant 0 : i32
    %c0_i32_0 = arith.constant 0 : i32
    %c0_i32_1 = arith.constant 0 : i32
    return %c0_i32, %c0_i32_0 : i32, i32
  }
  func.func @transform_9(%arg0: i32, %arg1: i32) -> (i32, i32, i32) {
    %c0_i32 = arith.constant 0 : i32
    %c0_i32_0 = arith.constant 0 : i32
    return %arg0, %c0_i32, %arg1 : i32, i32, i32
  }
}

</mosaic_0001>

<bundles_post_ra>
// kernel: _lambda_.1
= control target key start
LH: loop header
LB: loop body
LE: loop exit
PB: predicated region body
PF: predicated region fallthrough
CT: control target
= control target key end

     0   :  { %s1688_s30 = smov 0   ;;  %s1690_s10 = smov 0   ;;  %s2233_s0 = inlined_call_operand.vmem [shape: f32[2,32,256], index: 0, kind: input, shape index: {}]   ;;  %s2234_s1 = inlined_call_operand.vmem [shape: f32[32,32], index: 1, kind: input, shape index: {}]   ;;  %s2235_s2 = inlined_call_operand.vmem [shape: f32[32,1], index: 2, kind: input, shape index: {}]   ;;  %s2236_s3 = inlined_call_operand.vmem [shape: f32[16,32], index: 3, kind: input, shape index: {}]   ;;  %s2237_s4 = inlined_call_operand.vmem [shape: f32[16,1], index: 4, kind: input, shape index: {}]   ;;  %s2238_s5 = inlined_call_operand.vmem [shape: f32[8,16], index: 5, kind: input, shape index: {}]   ;;  %s2239_s6 = inlined_call_operand.vmem [shape: f32[8,1], index: 6, kind: input, shape index: {}]   ;;  %s2240_s7 = inlined_call_operand.vmem [shape: f32[2,8], index: 7, kind: input, shape index: {}]   ;;  %s2241_s8 = inlined_call_operand.vmem [shape: f32[2,1], index: 8, kind: input, shape index: {}]   ;;  %s2242_s9 = inlined_call_operand.vmem [shape: f32[2,2,256], index: 9, kind: output, shape index: {}]  }
   0x1   :  { %s1692_s11 = smov 0  }
   0x2 LB: > { %s31_s12 = sadd.s32 1, %s1630_s10  ;;  %p1498_p0 = scmp.ge.s32.totalorder %s1634_s11, 1  ;;  %s1634_s11 = sphi %s1692_s11, %s19_s11   ;;  %s1630_s10 = sphi %s1690_s10, %s2258_s10   ;;  %s1626_s30 = sphi %s1688_s30, %s2257_s30  }
   0x3   : > { %p33_p1 = scmp.ge.s32.totalorder %s31_s12, 2  ;;  %p308_p2 = scmp.lt.s32.totalorder %s1634_s11, 3 }
   0x5   : > { %s2260_s12 = smov (%p33_p1, %s31_s12), 0  ;;  %p309_p3 = pnand %p1498_p0, %p308_p2 }
   0x6   : > { %p353_p4 = scmp.lt.s32.totalorder (!%p309_p3), %s1626_s30, 1 }
   0x7   : > { %312 = sbr.rel (%p309_p3) target bundleno = 892 (0x37c), region = 56 }
   0xc   : > { %v1636_v0 = vmov 32.0   ;;  %s2262_s30 = smov (!%p353_p4, %s1626_s30), 1  ;;  %vm501_vm7 = vcmask 261120  }
   0xd   : > { %1566 = vrcp.f32 %v1636_v0  ;;  %s1535_s13 = sshll.u32 %s2262_s30, 6  ;;  %s1536_s15 = sshll.u32 %s2262_s30, 2 }
   0xe   : > { %s360_s16 = scalar_lea.vmem %s2233_s0, %s1535_s13  ;;  %s370_s18 = scalar_lea.vmem %s2242_s9, %s1536_s15 }
   0xf   : > { %v372_v1 = vld [vmem:[%s360_s16] sm:$0xff]  ;;  %v374_v2 = vld [vmem:[%s360_s16 + $0x10] sm:$0xff]  ;;  %v373_v6 = vld [vmem:[%s360_s16 + $0x8] sm:$0xff] }
  0x10   : > { %v376_v3 = vld [vmem:[%s360_s16 + $0x20] sm:$0xff]  ;;  %v380_v5 = vadd.f32 %v374_v2, %v372_v1  ;;  %v375_v7 = vld [vmem:[%s360_s16 + $0x18] sm:$0xff]  ;;  %v378_v8 = vld [vmem:[%s360_s16 + $0x30] sm:$0xff] }
  0x11   : > { %v377_v10 = vld [vmem:[%s360_s16 + $0x28] sm:$0xff]  ;;  %v389_v11 = vadd.f32 %v375_v7, %v373_v6  ;;  %v379_v13 = vld [vmem:[%s360_s16 + $0x38] sm:$0xff] }
  0x12   : > { %v381_v12 = vadd.f32 %v380_v5, %v376_v3 }
  0x13   : > { %v1567_v4 = vpop.eup %1566  ;;  %v390_v15 = vadd.f32 %v389_v11, %v377_v10  ;;  %v477_v11 = vld [vmem:[%s2235_s2] sm:$0xff] }
  0x14   : > { %v399_v9 = vmul.f32 32.0, %v1567_v4  ;;  %v382_v16 = vadd.f32 %v381_v12, %v378_v8  ;;  %vm403_vm0 = vweird.f32 %v1567_v4  ;;  %v480_v12 = vld [vmem:[%s2235_s2 + $0x18] sm:$0xff] }
  0x15   : > { %v391_v17 = vadd.f32 %v390_v15, %v379_v13 }
  0x16   : > { %v400_v14 = vsub.f32 1.0, %v399_v9  ;;  %v383_v18 = vrot.slane %v382_v16, 4 }
  0x17   : > { %v392_v20 = vrot.slane %v391_v17, 4 }
  0x18   : > { %v401_v19 = vmul.f32 %v1567_v4, %v400_v14  ;;  %v384_v21 = vadd.f32 %v383_v18, %v382_v16 }
  0x19   : > { %v393_v22 = vadd.f32 %v392_v20, %v391_v17 }
  0x1a   : > { %v385_v23 = vrot.slane %v384_v21, 2  ;;  %v402_v24 = vadd.f32 %v1567_v4, %v401_v19 }
  0x1b   : > { %v394_v25 = vrot.slane %v393_v22, 2 }
  0x1c   : > { %v386_v26 = vadd.f32 %v385_v23, %v384_v21  ;;  %v404_v29 = vsel %vm403_vm0, %v1567_v4, %v402_v24  ;;  %v479_v21 = vld [vmem:[%s2235_s2 + $0x10] sm:$0xff] }
  0x1d   : > { %v395_v27 = vadd.f32 %v394_v25, %v393_v22 }
  0x1e   : > { %v387_v28 = vrot.slane %v386_v26, 1 }
  0x1f   : > { %v396_v30 = vrot.slane %v395_v27, 1 }
  0x20   : > { %v388_v31 = vadd.f32 %v387_v28, %v386_v26 }
  0x21   : > { %v397_v32 = vadd.f32 %v396_v30, %v395_v27 }
  0x22   : > { %v405_v33 = vmul.f32 %v404_v29, %v388_v31 }
  0x23   : > { %v406_v34 = vmul.f32 %v404_v29, %v397_v32 }
  0x24   : > { %v1712_v35 = vsub.f32 %v372_v1, %v405_v33  ;;  %v1714_v36 = vsub.f32 %v374_v2, %v405_v33  ;;  %v1716_v37 = vsub.f32 %v376_v3, %v405_v33  ;;  %v1718_v38 = vsub.f32 %v378_v8, %v405_v33  ;;  %v1167_v33 = vld [vmem:[%s2239_s6] sm:$0xff] }
  0x25   : > { %v1720_v39 = vsub.f32 %v373_v6, %v406_v34  ;;  %v1722_v40 = vsub.f32 %v375_v7, %v406_v34  ;;  %v1724_v41 = vsub.f32 %v377_v10, %v406_v34  ;;  %v1726_v42 = vsub.f32 %v379_v13, %v406_v34  ;;  %v478_v6 = vld [vmem:[%s2235_s2 + $0x8] sm:$0xff]  ;;  %v1306_v34 = vld [vmem:[%s2241_s8] sm:$0x3] }
  0x26   : > { %v415_v43 = vmul.f32 %v1712_v35, %v1712_v35  ;;  %v417_v44 = vmul.f32 %v1714_v36, %v1714_v36  ;;  %v419_v45 = vmul.f32 %v1716_v37, %v1716_v37  ;;  %v421_v49 = vmul.f32 %v1718_v38, %v1718_v38 }
  0x27   : > { %v416_v46 = vmul.f32 %v1720_v39, %v1720_v39  ;;  %v418_v47 = vmul.f32 %v1722_v40, %v1722_v40  ;;  %v420_v48 = vmul.f32 %v1724_v41, %v1724_v41  ;;  %v422_v51 = vmul.f32 %v1726_v42, %v1726_v42 }
  0x28   : > { %v423_v50 = vadd.f32 %v417_v44, %v415_v43  ;;  %v1637_v8 = vmov 0  }
  0x29   : > { %v432_v52 = vadd.f32 %v418_v47, %v416_v46  ;;  %1564 = vset.pattern.permute.xlu1 %v1637_v8  ;;  %1563 = vset.pattern.permute.xlu0 %v1637_v8 }
  0x2a   : > { %v424_v53 = vadd.f32 %v423_v50, %v419_v45  ;;  %488 = vperm.xlu1 %1564, %v478_v6   ;;  %1565 = vset.pattern.permute.xlu2 %v1637_v8 }
  0x2b   : > { %v433_v54 = vadd.f32 %v432_v52, %v420_v48  ;;  %498 = vperm.xlu0 %1563, %v480_v12  }
  0x2c   : > { %v425_v55 = vadd.f32 %v424_v53, %v421_v49 }
  0x2d   : > { %v434_v56 = vadd.f32 %v433_v54, %v422_v51 }
  0x2e   : > { %v426_v57 = vrot.slane %v425_v55, 4 }
  0x2f   : > { %v435_v58 = vrot.slane %v434_v56, 4 }
  0x30   : > { %v427_v59 = vadd.f32 %v426_v57, %v425_v55 }
  0x31   : > { %v436_v60 = vadd.f32 %v435_v58, %v434_v56 }
  0x32   : > { %v428_v61 = vrot.slane %v427_v59, 2  ;;  %483 = vperm.xlu1 %1564, %v477_v11  }
  0x33   : > { %v437_v62 = vrot.slane %v436_v60, 2  ;;  %493 = vperm.xlu0 %1563, %v479_v21  }
  0x34   : > { %v429_v63 = vadd.f32 %v428_v61, %v427_v59 }
  0x35   : > { %v438_v0 = vadd.f32 %v437_v62, %v436_v60 }
  0x36   : > { %v430_v1 = vrot.slane %v429_v63, 1 }
  0x37   : > { %v439_v2 = vrot.slane %v438_v0, 1 }
  0x38   : > { %v431_v3 = vadd.f32 %v430_v1, %v429_v63 }
  0x39   : > { %v440_v4 = vadd.f32 %v439_v2, %v438_v0 }
  0x3a   : > { %v441_v5 = vmul.f32 %v431_v3, %v404_v29  ;;  %1309 = vperm.xlu1 %1564, %v1306_v34  }
  0x3b   : > { %v442_v7 = vmul.f32 %v440_v4, %v404_v29  ;;  %1170 = vperm.xlu0 %1563, %v1167_v33  }
  0x3c   : > { %v443_v9 = vadd.f32 1e-05, %v441_v5 }
  0x3d   : > { %v444_v10 = vadd.f32 1e-05, %v442_v7 }
  0x3e   : > { %1568 = vrsqrt.f32 %v443_v9  ;;  %vm451_vm1 = vweird.f32 %v443_v9 }
  0x3f   : > { %1570 = vrsqrt.f32 %v444_v10  ;;  %vm461_vm3 = vweird.f32 %v444_v10 }
  0x44   : > { %v1569_v13 = vpop.eup %1568 }
  0x45   : > { %v1571_v14 = vpop.eup %1570  ;;  %v446_v15 = vmul.f32 %v1569_v13, %v443_v9  ;;  %vm452_vm2 = vweird.f32 %v1569_v13 }
  0x46   : > { %v456_v16 = vmul.f32 %v1571_v14, %v444_v10  ;;  %vm462_vm4 = vweird.f32 %v1571_v14  ;;  %vm453_vm5 = vmor %vm451_vm1, %vm452_vm2 }
  0x47   : > { %v447_v17 = vmul.f32 %v1569_v13, %v446_v15  ;;  %vm463_vm6 = vmor %vm461_vm3, %vm462_vm4 }
  0x48   : > { %v457_v18 = vmul.f32 %v1571_v14, %v456_v16 }
  0x49   : > { %v448_v19 = vmul.f32 0.5, %v447_v17 }
  0x4a   : > { %v458_v20 = vmul.f32 0.5, %v457_v18 }
  0x4b   : > { %v449_v22 = vsub.f32 1.5, %v448_v19 }
  0x4c   : > { %v459_v23 = vsub.f32 1.5, %v458_v20 }
  0x4d   : > { %v450_v24 = vmul.f32 %v1569_v13, %v449_v22 }
  0x4e   : > { %v460_v25 = vmul.f32 %v1571_v14, %v459_v23 }
  0x4f   : > { %v454_v26 = vsel %vm453_vm5, %v1569_v13, %v450_v24 }
  0x50   : > { %v471_v27 = vmul.f32 %v454_v26, %v1718_v38  ;;  %v464_v28 = vsel %vm463_vm6, %v1571_v14, %v460_v25  ;;  %v469_v29 = vmul.f32 %v454_v26, %v1716_v37  ;;  %v467_v32 = vmul.f32 %v454_v26, %v1714_v36  ;;  %v473_v36 = vld [vmem:[%s2234_s1] sm:$0xff] }
  0x51   : > { %v472_v30 = vmul.f32 %v464_v28, %v1726_v42  ;;  %v470_v31 = vmul.f32 %v464_v28, %v1724_v41  ;;  %v468_v38 = vmul.f32 %v464_v28, %v1722_v40  ;;  %v465_v37 = vmul.f32 %v454_v26, %v1712_v35  ;;  %v474_v35 = vld [vmem:[%s2234_s1 + $0x8] sm:$0xff]  ;;  %v476_v40 = vld [vmem:[%s2234_s1 + $0x18] sm:$0xff] }
  0x52   : > { %526 = vmatpush.msra.mxu0 %v471_v27  ;;  %v466_v41 = vmul.f32 %v464_v28, %v1720_v39  ;;  %v475_v39 = vld [vmem:[%s2234_s1 + $0x10] sm:$0xff] }
  0x53   : > { %555 = vmatpush.msra.mxu1 %v472_v30 }
  0x54   : > { %527 = vmatpush.msra.mxu0 %v469_v29 }
  0x55   : > { %556 = vmatpush.msra.mxu1 %v470_v31 }
  0x56   : > { %528 = vmatpush.msra.mxu0 %v467_v32 }
  0x57   : > { %557 = vmatpush.msra.mxu1 %v468_v38 }
  0x58   : > { %529 = vmatpush.msra.mxu0 %v465_v37 }
  0x59   : > { %558 = vmatpush.msra.mxu1 %v466_v41  ;;  %1503 = vmatmul.msk.f32.vlgmr.msra.gmra.mxu0 %vm501_vm7, %v473_v36 }
  0x5a   : > { %1507 = vmatmul.msk.f32.vlgmr.msra.gmra.mxu1 %vm501_vm7, %v473_v36 }
  0x61   : > { %1504 = vmatmul.msk.f32.gmra.mxu0 %vm501_vm7, %v474_v35 }
  0x62   : > { %1508 = vmatmul.msk.f32.gmra.mxu1 %vm501_vm7, %v474_v35 }
  0x69   : > { %1505 = vmatmul.msk.f32.gmra.mxu0 %vm501_vm7, %v475_v39 }
  0x6a   : > { %1509 = vmatmul.msk.f32.gmra.mxu1 %vm501_vm7, %v475_v39 }
  0x71   : > { %1506 = vmatmul.msk.f32.gmra.mxu0 %vm501_vm7, %v476_v40 }
  0x72   : > { %1510 = vmatmul.msk.f32.gmra.mxu1 %vm501_vm7, %v476_v40 }
  0x9c   : > { %v489_v42 = vpop.permute.xlu1 %488 }
  0x9d   : > { %v499_v47 = vpop.permute.xlu0 %498 }
  0xa4   : > { %v484_v43 = vpop.permute.xlu1 %483 }
  0xa5   : > { %v494_v63 = vpop.permute.xlu0 %493 }
  0xd6   : > { %v531_v44 = vpop.f32.mrf.mxu0 }
  0xd7   : > { %v560_v45 = vpop.f32.mrf.mxu1  ;;  %v1790_v46 = vadd.f32 %v531_v44, %v484_v43 }
  0xd8   : > { %v1801_v54 = vadd.f32 %v560_v45, %v484_v43 }
  0xd9   : > { %v1793_v48 = vmul.f32 0.70710677, %v1790_v46 }
  0xda   : > { %v1816_v60 = vmul.f32 0.70710677, %v1801_v54 }
  0xdb   : > { %v588_v53 = vmul.f32 %v1793_v48, %v1793_v48 }
  0xdc   : > { %v628_v7 = vmul.f32 %v1816_v60, %v1816_v60 }
  0xdd   : > { %v1813_v59 = vmin.f32 %v588_v53, 16.0 }
  0xde   : > { %v534_v49 = vpop.f32.mrf.mxu0  ;;  %v1835_v16 = vmin.f32 %v628_v7, 16.0 }
  0xdf   : > { %v1795_v50 = vadd.f32 %v534_v49, %v489_v42  ;;  %v563_v51 = vpop.f32.mrf.mxu1  ;;  %v590_v6 = vmul.f32 2.1237322e-06, %v1813_v59 }
  0xe0   : > { %v1797_v52 = vadd.f32 %v563_v51, %v489_v42  ;;  %v630_v28 = vmul.f32 2.1237322e-06, %v1835_v16 }
  0xe1   : > { %v1804_v55 = vmul.f32 0.70710677, %v1795_v50  ;;  %v591_v15 = vadd.f32 0.00028619796, %v590_v6 }
  0xe2   : > { %v1807_v56 = vmul.f32 0.70710677, %v1797_v52  ;;  %v631_v39 = vadd.f32 0.00028619796, %v630_v28 }
  0xe3   : > { %v668_v57 = vmul.f32 %v1804_v55, %v1804_v55  ;;  %v592_v27 = vmul.f32 %v591_v15, %v1813_v59 }
  0xe4   : > { %v708_v58 = vmul.f32 %v1807_v56, %v1807_v56 }
  0xe5   : > { %v1818_v61 = vmin.f32 %v668_v57, 16.0  ;;  %v1862_v35 = vadd.f32 0.0036580483, %v592_v27 }
  0xe6   : > { %v1820_v62 = vmin.f32 %v708_v58, 16.0  ;;  %v537_v0 = vpop.f32.mrf.mxu0 }
  0xe7   : > { %v670_v1 = vmul.f32 2.1237322e-06, %v1818_v61  ;;  %v538_v2 = vadd.f32 %v537_v0, %v494_v63  ;;  %v566_v3 = vpop.f32.mrf.mxu1  ;;  %v681_v31 = vmul.f32 3.8918573e-05, %v1818_v61 }
  0xe8   : > { %v710_v4 = vmul.f32 2.1237322e-06, %v1820_v62  ;;  %v567_v5 = vadd.f32 %v566_v3, %v494_v63  ;;  %v721_v36 = vmul.f32 3.8918573e-05, %v1820_v62 }
  0xe9   : > { %v671_v8 = vadd.f32 0.00028619796, %v670_v1  ;;  %v1827_v10 = vmul.f32 0.70710677, %v538_v2  ;;  %v1867_v43 = vmul.f32 0.5, %v538_v2 }
  0xea   : > { %v711_v9 = vadd.f32 0.00028619796, %v710_v4  ;;  %v1830_v12 = vmul.f32 0.70710677, %v567_v5  ;;  %v1871_v51 = vmul.f32 0.5, %v567_v5  ;;  %v1883_v5 = vmul.f32 %v631_v39, %v1835_v16 }
  0xeb   : > { %v672_v11 = vmul.f32 %v671_v8, %v1818_v61  ;;  %v748_v14 = vmul.f32 %v1827_v10, %v1827_v10  ;;  %v722_v1 = vadd.f32 0.001143296, %v721_v36 }
  0xec   : > { %v712_v13 = vmul.f32 %v711_v9, %v1820_v62  ;;  %v788_v17 = vmul.f32 %v1830_v12, %v1830_v12 }
  0xed   : > { %v1839_v18 = vmin.f32 %v748_v14, 16.0  ;;  %v673_v20 = vadd.f32 0.0036580483, %v672_v11 }
  0xee   : > { %v540_v19 = vpop.f32.mrf.mxu0  ;;  %v1841_v21 = vmin.f32 %v788_v17, 16.0  ;;  %v713_v24 = vadd.f32 0.0036580483, %v712_v13 }
  0xef   : > { %v1843_v22 = vadd.f32 %v540_v19, %v499_v47  ;;  %v569_v23 = vpop.f32.mrf.mxu1  ;;  %v750_v25 = vmul.f32 2.1237322e-06, %v1839_v18  ;;  %v674_v32 = vmul.f32 %v673_v20, %v1818_v61  ;;  %v761_v6 = vmul.f32 3.8918573e-05, %v1839_v18 }
  0xf0   : > { %v1846_v26 = vadd.f32 %v569_v23, %v499_v47  ;;  %v790_v29 = vmul.f32 2.1237322e-06, %v1841_v21  ;;  %v714_v38 = vmul.f32 %v713_v24, %v1820_v62  ;;  %v682_v47 = vadd.f32 0.001143296, %v681_v31 }
  0xf1   : > { %v751_v30 = vadd.f32 0.00028619796, %v750_v25  ;;  %v1854_v34 = vmul.f32 0.70710677, %v1843_v22  ;;  %v675_v49 = vadd.f32 0.05243302, %v674_v32  ;;  %v723_v23 = vmul.f32 %v722_v1, %v1820_v62 }
  0xf2   : > { %v791_v33 = vadd.f32 0.00028619796, %v790_v29  ;;  %v1859_v41 = vmul.f32 0.70710677, %v1846_v26  ;;  %v715_v58 = vadd.f32 0.05243302, %v714_v38  ;;  %v683_v15 = vmul.f32 %v682_v47, %v1818_v61 }
  0xf3   : > { %v752_v37 = vmul.f32 %v751_v30, %v1839_v18  ;;  %v828_v42 = vmul.f32 %v1854_v34, %v1854_v34  ;;  %v801_v9 = vmul.f32 3.8918573e-05, %v1841_v21  ;;  %v676_v11 = vmul.f32 %v675_v49, %v1818_v61 }
  0xf4   : > { %v792_v40 = vmul.f32 %v791_v33, %v1841_v21  ;;  %v868_v45 = vmul.f32 %v1859_v41, %v1859_v41  ;;  %v762_v28 = vadd.f32 0.001143296, %v761_v6  ;;  %v716_v29 = vmul.f32 %v715_v58, %v1820_v62 }
  0xf5   : > { %v753_v44 = vadd.f32 0.0036580483, %v752_v37  ;;  %v1873_v57 = vmin.f32 %v828_v42, 16.0  ;;  %v802_v32 = vadd.f32 0.001143296, %v801_v9 }
  0xf6   : > { %v793_v53 = vadd.f32 0.0036580483, %v792_v40  ;;  %v1876_v0 = vmin.f32 %v868_v45, 16.0  ;;  %v677_v33 = vadd.f32 0.18741608, %v676_v11  ;;  %v763_v36 = vmul.f32 %v762_v28, %v1839_v18 }
  0xf7   : > { %v754_v63 = vmul.f32 %v753_v44, %v1839_v18  ;;  %v830_v3 = vmul.f32 2.1237322e-06, %v1873_v57  ;;  %v841_v4 = vmul.f32 3.8918573e-05, %v1873_v57  ;;  %v803_v44 = vmul.f32 %v802_v32, %v1841_v21 }
  0xf8   : > { %v794_v2 = vmul.f32 %v793_v53, %v1841_v21  ;;  %v870_v8 = vmul.f32 2.1237322e-06, %v1876_v0  ;;  %v881_v20 = vmul.f32 3.8918573e-05, %v1876_v0  ;;  %v764_v53 = vadd.f32 0.014752088, %v763_v36 }
  0xf9   : > { %v755_v7 = vadd.f32 0.05243302, %v754_v63  ;;  %v831_v13 = vadd.f32 0.00028619796, %v830_v3  ;;  %v842_v14 = vadd.f32 0.001143296, %v841_v4  ;;  %v678_v3 = vmul.f32 %v677_v33, %v1818_v61 }
  0xfa   : > { %v795_v17 = vadd.f32 0.05243302, %v794_v2  ;;  %v871_v19 = vadd.f32 0.00028619796, %v870_v8  ;;  %v882_v31 = vadd.f32 0.001143296, %v881_v20 }
  0xfb   : > { %v756_v24 = vmul.f32 %v755_v7, %v1839_v18  ;;  %v832_v25 = vmul.f32 %v831_v13, %v1873_v57  ;;  %v843_v27 = vmul.f32 %v842_v14, %v1873_v57  ;;  %v717_v58 = vadd.f32 0.18741608, %v716_v29 }
  0xfc   : > { %v872_v30 = vmul.f32 %v871_v19, %v1876_v0  ;;  %v796_v39 = vmul.f32 %v795_v17, %v1841_v21  ;;  %v883_v42 = vmul.f32 %v882_v31, %v1876_v0  ;;  %v804_v2 = vadd.f32 0.014752088, %v803_v44 }
  0xfd   : > { %v833_v38 = vadd.f32 0.0036580483, %v832_v25  ;;  %v844_v37 = vadd.f32 0.014752088, %v843_v27  ;;  %v757_v45 = vadd.f32 0.18741608, %v756_v24  ;;  %v765_v7 = vmul.f32 %v764_v53, %v1839_v18 }
  0xfe   : > { %v873_v40 = vadd.f32 0.0036580483, %v872_v30  ;;  %v884_v1 = vadd.f32 0.014752088, %v883_v42  ;;  %v797_v8 = vadd.f32 0.18741608, %v796_v39  ;;  %v805_v13 = vmul.f32 %v804_v2, %v1841_v21 }
  0xff   : > { %v834_v47 = vmul.f32 %v833_v38, %v1873_v57  ;;  %v845_v49 = vmul.f32 %v844_v37, %v1873_v57  ;;  %v758_v14 = vmul.f32 %v757_v45, %v1839_v18  ;;  %v766_v20 = vadd.f32 0.112945676, %v765_v7 }
 0x100   : > { %v874_v63 = vmul.f32 %v873_v40, %v1876_v0  ;;  %v885_v11 = vmul.f32 %v884_v1, %v1876_v0  ;;  %v806_v27 = vadd.f32 0.112945676, %v805_v13  ;;  %v684_v28 = vadd.f32 0.014752088, %v683_v15 }
 0x101   : > { %v835_v4 = vadd.f32 0.05243302, %v834_v47  ;;  %v846_v6 = vadd.f32 0.112945676, %v845_v49  ;;  %v767_v31 = vmul.f32 %v766_v20, %v1839_v18  ;;  %v724_v32 = vadd.f32 0.014752088, %v723_v23 }
 0x102   : > { %v875_v9 = vadd.f32 0.05243302, %v874_v63  ;;  %v886_v25 = vadd.f32 0.112945676, %v885_v11  ;;  %v807_v37 = vmul.f32 %v806_v27, %v1841_v21  ;;  %v685_v36 = vmul.f32 %v684_v28, %v1818_v61 }
 0x103   : > { %v836_v17 = vmul.f32 %v835_v4, %v1873_v57  ;;  %v847_v19 = vmul.f32 %v846_v6, %v1873_v57  ;;  %v798_v39 = vmul.f32 %v797_v8, %v1841_v21  ;;  %v768_v42 = vadd.f32 0.4994258, %v767_v31 }
 0x104   : > { %v876_v24 = vmul.f32 %v875_v9, %v1876_v0  ;;  %v887_v38 = vmul.f32 %v886_v25, %v1876_v0  ;;  %v725_v44 = vmul.f32 %v724_v32, %v1820_v62  ;;  %v808_v47 = vadd.f32 0.4994258, %v807_v37 }
 0x105   : > { %v837_v29 = vadd.f32 0.18741608, %v836_v17  ;;  %v848_v30 = vadd.f32 0.4994258, %v847_v19  ;;  %v686_v49 = vadd.f32 0.112945676, %v685_v36  ;;  %v718_v23 = vmul.f32 %v717_v58, %v1820_v62 }
 0x106   : > { %v877_v33 = vadd.f32 0.18741608, %v876_v24  ;;  %v888_v45 = vadd.f32 0.4994258, %v887_v38  ;;  %v769_v1 = vmul.f32 %v768_v42, %v1839_v18  ;;  %v679_v2 = vadd.f32 1.1283791, %v678_v3 }
 0x107   : > { %v849_v40 = vmul.f32 %v848_v30, %v1873_v57  ;;  %v838_v15 = vmul.f32 %v837_v29, %v1873_v57  ;;  %v809_v6 = vmul.f32 %v808_v47, %v1841_v21  ;;  %v687_v7 = vmul.f32 %v686_v49, %v1818_v61 }
 0x108   : > { %v878_v53 = vmul.f32 %v877_v33, %v1876_v0  ;;  %v889_v4 = vmul.f32 %v888_v45, %v1876_v0  ;;  %v759_v8 = vadd.f32 1.1283791, %v758_v14  ;;  %v1928_v57 = vmul.f32 0.5, %v1843_v22 }
 0x109   : > { %v1921_v63 = vadd.f32 1.0, %v849_v40  ;;  %v726_v58 = vadd.f32 0.112945676, %v725_v44  ;;  %v799_v9 = vadd.f32 1.1283791, %v798_v39  ;;  %v1933_v17 = vadd.f32 1.0, %v769_v1 }
 0x10a   : > { %v839_v11 = vadd.f32 1.1283791, %v838_v15  ;;  %v1931_v13 = vadd.f32 1.0, %v889_v4  ;;  %v1935_v18 = vadd.f32 1.1283791, %v718_v23  ;;  %v1938_v21 = vmul.f32 0.5, %v1846_v26 }
 0x10b   : > { %1572 = vrcp.f32 %v1921_v63  ;;  %v879_v0 = vadd.f32 1.1283791, %v878_v53  ;;  %v1940_v3 = vadd.f32 1.0, %v809_v6  ;;  %v1943_v22 = vmul.f32 %v679_v2, %v1804_v55 }
 0x10c   : > { %v860_v14 = vand.u32 2147483647, %v1921_v63  ;;  %1574 = vrcp.f32 %v1931_v13  ;;  %v688_v19 = vadd.f32 0.4994258, %v687_v7  ;;  %v1948_v20 = vmul.f32 %v759_v8, %v1827_v10 }
 0x10d   : > { %v862_v24 = vand.u32 2147483648, %v1921_v63  ;;  %1576 = vrcp.f32 %v1933_v17  ;;  %v727_v26 = vmul.f32 %v726_v58, %v1820_v62  ;;  %v1954_v25 = vmul.f32 %v799_v9, %v1830_v12 }
 0x10e   : > { %v840_v55 = vmul.f32 %v839_v11, %v1854_v34  ;;  %v902_v27 = vand.u32 2147483648, %v1931_v13  ;;  %1578 = vrcp.f32 %v1940_v3  ;;  %v1960_v29 = vmul.f32 %v879_v0, %v1859_v41 }
 0x10f   : > { %vm856_vm8 = vweird.f32 %v1921_v63  ;;  %v900_v10 = vand.u32 2147483647, %v1931_v13  ;;  %v782_v30 = vand.u32 2147483648, %v1933_v17  ;;  %vm1966_vm9 = vcmp.eq.f32.partialorder %v860_v14, 8.507059e+37 }
 0x110   : > { %v780_v34 = vand.u32 2147483647, %v1933_v17  ;;  %v822_v32 = vand.u32 2147483648, %v1940_v3  ;;  %v689_v33 = vmul.f32 %v688_v19, %v1818_v61  ;;  %v863_v41 = vor.u32 1.1754944e-38, %v862_v24 }
 0x111   : > { %v1573_v28 = vpop.eup %1572  ;;  %vm896_vm10 = vweird.f32 %v1931_v13  ;;  %v820_v38 = vand.u32 2147483647, %v1940_v3  ;;  %v728_v37 = vadd.f32 0.4994258, %v727_v26  ;;  %v903_v40 = vor.u32 1.1754944e-38, %v902_v27 }
 0x112   : > { %v852_v31 = vmul.f32 %v1573_v28, %v1921_v63  ;;  %v1575_v36 = vpop.eup %1574  ;;  %vm776_vm11 = vweird.f32 %v1933_v17  ;;  %v1976_v42 = vadd.f32 1.0, %v689_v33  ;;  %v601_v44 = vmul.f32 3.8918573e-05, %v1813_v59 }
 0x113   : > { %v1577_v15 = vpop.eup %1576  ;;  %vm857_vm12 = vweird.f32 %v1573_v28  ;;  %v892_v45 = vmul.f32 %v1575_v36, %v1931_v13  ;;  %vm1980_vm13 = vcmp.eq.f32.partialorder %v900_v10, 8.507059e+37  ;;  %v783_v47 = vor.u32 1.1754944e-38, %v782_v30 }
 0x114   : > { %v853_v39 = vsub.f32 1.0, %v852_v31  ;;  %vm816_vm14 = vweird.f32 %v1940_v3  ;;  %v729_v49 = vmul.f32 %v728_v37, %v1820_v62  ;;  %v1579_v23 = vpop.eup %1578  ;;  %v772_v1 = vmul.f32 %v1577_v15, %v1933_v17  ;;  %vm858_vm3 = vmor %vm856_vm8, %vm857_vm12 }
 0x115   : > { %vm1987_vm15 = vcmp.eq.f32.partialorder %v780_v34, 8.507059e+37  ;;  %v823_v4 = vor.u32 1.1754944e-38, %v822_v32  ;;  %1580 = vrcp.f32 %v1976_v42  ;;  %v893_v6 = vsub.f32 1.0, %v892_v45 }
 0x116   : > { %v854_v53 = vmul.f32 %v1573_v28, %v853_v39  ;;  %vm897_vm0 = vweird.f32 %v1575_v36  ;;  %v812_v7 = vmul.f32 %v1579_v23, %v1940_v3  ;;  %vm1993_vm1 = vcmp.eq.f32.partialorder %v820_v38, 8.507059e+37 }
 0x117   : > { %v641_v62 = vmul.f32 3.8918573e-05, %v1835_v16  ;;  %v773_v9 = vsub.f32 1.0, %v772_v1  ;;  %vm777_vm2 = vweird.f32 %v1577_v15  ;;  %v602_v11 = vadd.f32 0.001143296, %v601_v44  ;;  %vm898_vm5 = vmor %vm896_vm10, %vm897_vm0 }
 0x118   : > { %v855_v58 = vadd.f32 %v1573_v28, %v854_v53  ;;  %v894_v0 = vmul.f32 %v1575_v36, %v893_v6  ;;  %v813_v14 = vsub.f32 1.0, %v812_v7  ;;  %v700_v19 = vand.u32 2147483647, %v1976_v42  ;;  %vm778_vm8 = vmor %vm776_vm11, %vm777_vm2 }
 0x119   : > { %v2002_v24 = vadd.f32 1.0, %v729_v49  ;;  %v774_v27 = vmul.f32 %v1577_v15, %v773_v9  ;;  %vm817_vm4 = vweird.f32 %v1579_v23  ;;  %v702_v10 = vand.u32 2147483648, %v1976_v42 }
 0x11a   : > { %v859_v26 = vsel %vm858_vm3, %v1573_v28, %v855_v58  ;;  %v895_v31 = vadd.f32 %v1575_v36, %v894_v0  ;;  %v814_v34 = vmul.f32 %v1579_v23, %v813_v14  ;;  %vm696_vm6 = vweird.f32 %v1976_v42  ;;  %vm818_vm10 = vmor %vm816_vm14, %vm817_vm4 }
 0x11b   : > { %v864_v30 = vsel %vm1966_vm9, %v863_v41, %v859_v26  ;;  %1582 = vrcp.f32 %v2002_v24  ;;  %v1581_v63 = vpop.eup %1580  ;;  %v775_v33 = vadd.f32 %v1577_v15, %v774_v27  ;;  %v603_v28 = vmul.f32 %v602_v11, %v1813_v59 }
 0x11c   : > { %v865_v32 = vmul.f32 %v864_v30, %v840_v55  ;;  %v899_v38 = vsel %vm898_vm5, %v1575_v36, %v895_v31  ;;  %v815_v12 = vadd.f32 %v1579_v23, %v814_v34  ;;  %v692_v41 = vmul.f32 %v1581_v63, %v1976_v42 }
 0x11d   : > { %vm2017_vm9 = vcmp.eq.f32.partialorder %v700_v19, 8.507059e+37  ;;  %v904_v13 = vsel %vm1980_vm13, %v903_v40, %v899_v38  ;;  %v779_v39 = vsel %vm778_vm8, %v1577_v15, %v775_v33  ;;  %v703_v36 = vor.u32 1.1754944e-38, %v702_v10 }
 0x11e   : > { %v1517_v55 = vclamps-f32 %v865_v32, 1.0  ;;  %v905_v17 = vmul.f32 %v904_v13, %v1960_v29  ;;  %v784_v44 = vsel %vm1987_vm15, %v783_v47, %v779_v39  ;;  %v819_v45 = vsel %vm818_vm10, %v1579_v23, %v815_v12 }
 0x11f   : > { %v693_v49 = vsub.f32 1.0, %v692_v41  ;;  %v785_v1 = vmul.f32 %v784_v44, %v1948_v20  ;;  %v824_v61 = vsel %vm1993_vm1, %v823_v4, %v819_v45  ;;  %vm697_vm11 = vweird.f32 %v1581_v63 }
 0x120   : > { %v914_v53 = vadd.f32 1.0, %v1517_v55  ;;  %v1518_v15 = vclamps-f32 %v905_v17, 1.0  ;;  %v825_v3 = vmul.f32 %v824_v61, %v1954_v25  ;;  %v604_v7 = vadd.f32 0.014752088, %v603_v28  ;;  %vm698_vm12 = vmor %vm696_vm6, %vm697_vm11 }
 0x121   : > { %v1583_v40 = vpop.eup %1582  ;;  %v694_v6 = vmul.f32 %v1581_v63, %v693_v49  ;;  %v1515_v58 = vclamps-f32 %v785_v1, 1.0  ;;  %v740_v23 = vand.u32 2147483647, %v2002_v24  ;;  %v742_v8 = vand.u32 2147483648, %v2002_v24 }
 0x122   : > { %v922_v29 = vmul.f32 %v914_v53, %v1928_v57  ;;  %v732_v47 = vmul.f32 %v1583_v40, %v2002_v24  ;;  %v915_v2 = vadd.f32 1.0, %v1518_v15  ;;  %v1516_v9 = vclamps-f32 %v825_v3, 1.0 }
 0x123   : > { %v695_v20 = vadd.f32 %v1581_v63, %v694_v6  ;;  %v912_v4 = vadd.f32 1.0, %v1515_v58  ;;  %v605_v11 = vmul.f32 %v604_v7, %v1813_v59  ;;  %v642_v57 = vadd.f32 0.001143296, %v641_v62 }
 0x124   : > { %956 = vmatpush.msra.mxu2 %v922_v29  ;;  %v733_v25 = vsub.f32 1.0, %v732_v47  ;;  %v923_v0 = vmul.f32 %v915_v2, %v1938_v21  ;;  %v913_v14 = vadd.f32 1.0, %v1516_v9  ;;  %vm737_vm13 = vweird.f32 %v1583_v40 }
 0x125   : > { %v699_v19 = vsel %vm698_vm12, %v1581_v63, %v695_v20  ;;  %v920_v26 = vmul.f32 %v912_v4, %v1867_v43  ;;  %v606_v30 = vadd.f32 0.112945676, %v605_v11  ;;  %v594_v42 = vmul.f32 %v1862_v35, %v1813_v59 }
 0x126   : > { %v704_v27 = vsel %vm2017_vm9, %v703_v36, %v699_v19  ;;  %v734_v10 = vmul.f32 %v1583_v40, %v733_v25  ;;  %979 = vmatpush.msra.mxu3 %v923_v0  ;;  %v921_v31 = vmul.f32 %v913_v14, %v1871_v51  ;;  %v643_v21 = vmul.f32 %v642_v57, %v1835_v16  ;;  %v926_v14 = vld [vmem:[%s2237_s4] sm:$0xff] }
 0x127   : > { %v705_v62 = vmul.f32 %v704_v27, %v1943_v22  ;;  %v574_v34 = vmul.f32 0.5, %v1795_v50  ;;  %957 = vmatpush.msra.mxu2 %v920_v26  ;;  %vm736_vm14 = vweird.f32 %v2002_v24  ;;  %v607_v43 = vmul.f32 %v606_v30, %v1813_v59 }
 0x128   : > { %v735_v63 = vadd.f32 %v1583_v40, %v734_v10  ;;  %v633_v32 = vadd.f32 0.0036580483, %v1883_v5  ;;  %980 = vmatpush.msra.mxu3 %v921_v31  ;;  %vm738_vm15 = vmor %vm736_vm14, %vm737_vm13  ;;  %v743_v35 = vor.u32 1.1754944e-38, %v742_v8  ;;  %v644_v51 = vadd.f32 0.014752088, %v643_v21 }
 0x129   : > { %v1513_v33 = vclamps-f32 %v705_v62, 1.0  ;;  %v720_v22 = vmul.f32 %v1935_v18, %v1807_v56  ;;  %vm741_vm0 = vcmp.eq.f32.partialorder %v740_v23, 8.507059e+37  ;;  %v608_v50 = vadd.f32 0.4994258, %v607_v43 }
 0x12a   : > { %v739_v28 = vsel %vm738_vm15, %v1583_v40, %v735_v63  ;;  %v595_v38 = vadd.f32 0.05243302, %v594_v42  ;;  %v645_v24 = vmul.f32 %v644_v51, %v1835_v16  ;;  %v634_v39 = vmul.f32 %v633_v32, %v1835_v16 }
 0x12b   : > { %v910_v12 = vadd.f32 1.0, %v1513_v33  ;;  %v744_v41 = vsel %vm741_vm0, %v743_v35, %v739_v28  ;;  %v609_v5 = vmul.f32 %v608_v50, %v1813_v59  ;;  %v575_v18 = vmul.f32 0.5, %v1797_v52  ;;  %v927_v52 = vld [vmem:[%s2237_s4 + $0x8] sm:$0xff]  ;;  %v924_v35 = vld [vmem:[%s2236_s3] sm:$0xff] }
 0x12c   : > { %v745_v37 = vmul.f32 %v744_v41, %v720_v22  ;;  %v646_v13 = vadd.f32 0.112945676, %v645_v24  ;;  %v596_v44 = vmul.f32 %v595_v38, %v1813_v59  ;;  %v635_v53 = vadd.f32 0.05243302, %v634_v39  ;;  %935 = vperm.xlu2 %1565, %v927_v52  }
 0x12d   : > { %v918_v55 = vmul.f32 %v910_v12, %v574_v34  ;;  %v610_v17 = vadd.f32 1.0, %v609_v5 }
 0x12e   : > { %v1514_v36 = vclamps-f32 %v745_v37, 1.0  ;;  %v647_v56 = vmul.f32 %v646_v13, %v1835_v16  ;;  %v597_v61 = vadd.f32 0.18741608, %v596_v44  ;;  %v636_v6 = vmul.f32 %v635_v53, %v1835_v16 }
 0x12f   : > { %958 = vmatpush.msra.mxu2 %v918_v55  ;;  %1584 = vrcp.f32 %v610_v17  ;;  %v622_v23 = vand.u32 2147483648, %v610_v17  ;;  %v620_v20 = vand.u32 2147483647, %v610_v17  ;;  %vm616_vm2 = vweird.f32 %v610_v17 }
 0x130   : > { %v911_v45 = vadd.f32 1.0, %v1514_v36  ;;  %v648_v49 = vadd.f32 0.4994258, %v647_v56  ;;  %v598_v7 = vmul.f32 %v597_v61, %v1813_v59  ;;  %v637_v47 = vadd.f32 0.18741608, %v636_v6 }
 0x131   : > { %v623_v59 = vor.u32 1.1754944e-38, %v622_v23  ;;  %vm621_vm4 = vcmp.eq.f32.partialorder %v620_v20, 8.507059e+37 }
 0x132   : > { %v919_v1 = vmul.f32 %v911_v45, %v575_v18  ;;  %v649_v40 = vmul.f32 %v648_v49, %v1835_v16  ;;  %v599_v2 = vadd.f32 1.1283791, %v598_v7  ;;  %v638_v25 = vmul.f32 %v637_v47, %v1835_v16 }
 0x134   : > { %981 = vmatpush.msra.mxu3 %v919_v1  ;;  %v650_v15 = vadd.f32 1.0, %v649_v40  ;;  %v600_v57 = vmul.f32 %v599_v2, %v1793_v48  ;;  %v639_v30 = vadd.f32 1.1283791, %v638_v25  ;;  %930 = vperm.xlu2 %1565, %v926_v14   ;;  %v572_v48 = vmul.f32 0.5, %v1790_v46 }
 0x135   : > { %v1585_v3 = vpop.eup %1584  ;;  %v573_v46 = vmul.f32 0.5, %v1801_v54 }
 0x136   : > { %v612_v29 = vmul.f32 %v1585_v3, %v610_v17  ;;  %1586 = vrcp.f32 %v650_v15  ;;  %vm617_vm1 = vweird.f32 %v1585_v3  ;;  %v662_v10 = vand.u32 2147483648, %v650_v15 }
 0x137   : > { %vm618_vm3 = vmor %vm616_vm2, %vm617_vm1  ;;  %v660_v31 = vand.u32 2147483647, %v650_v15  ;;  %vm656_vm6 = vweird.f32 %v650_v15  ;;  %v640_v63 = vmul.f32 %v639_v30, %v1816_v60  ;;  %v925_v60 = vld [vmem:[%s2236_s3 + $0x8] sm:$0xff] }
 0x138   : > { %v613_v58 = vsub.f32 1.0, %v612_v29  ;;  %v663_v34 = vor.u32 1.1754944e-38, %v662_v10 }
 0x139   : > { %vm661_vm9 = vcmp.eq.f32.partialorder %v660_v31, 8.507059e+37 }
 0x13a   : > { %v614_v9 = vmul.f32 %v1585_v3, %v613_v58 }
 0x13c   : > { %v1587_v8 = vpop.eup %1586  ;;  %v615_v4 = vadd.f32 %v1585_v3, %v614_v9 }
 0x13d   : > { %v652_v11 = vmul.f32 %v1587_v8, %v650_v15  ;;  %vm657_vm5 = vweird.f32 %v1587_v8 }
 0x13e   : > { %v619_v0 = vsel %vm618_vm3, %v1585_v3, %v615_v4  ;;  %vm658_vm8 = vmor %vm656_vm6, %vm657_vm5 }
 0x13f   : > { %v624_v19 = vsel %vm621_vm4, %v623_v59, %v619_v0  ;;  %v653_v26 = vsub.f32 1.0, %v652_v11 }
 0x140   : > { %v625_v27 = vmul.f32 %v624_v19, %v600_v57 }
 0x141   : > { %v654_v42 = vmul.f32 %v1587_v8, %v653_v26 }
 0x142   : > { %v1511_v16 = vclamps-f32 %v625_v27, 1.0 }
 0x143   : > { %v655_v62 = vadd.f32 %v1587_v8, %v654_v42 }
 0x144   : > { %v908_v21 = vadd.f32 1.0, %v1511_v16 }
 0x145   : > { %v659_v43 = vsel %vm658_vm8, %v1587_v8, %v655_v62 }
 0x146   : > { %v916_v32 = vmul.f32 %v908_v21, %v572_v48  ;;  %v664_v33 = vsel %vm661_vm9, %v663_v34, %v659_v43 }
 0x147   : > { %v665_v51 = vmul.f32 %v664_v33, %v640_v63 }
 0x148   : > { %959 = vmatpush.msra.mxu2 %v916_v32 }
 0x149   : > { %v1512_v22 = vclamps-f32 %v665_v51, 1.0  ;;  %1519 = vmatmul.msk.f32.vlgmr.msra.gmra.mxu2 %vm501_vm7, %v924_v35 }
 0x14b   : > { %v909_v28 = vadd.f32 1.0, %v1512_v22 }
 0x14d   : > { %v917_v50 = vmul.f32 %v909_v28, %v573_v46 }
 0x14f   : > { %982 = vmatpush.msra.mxu3 %v917_v50 }
 0x150   : > { %1521 = vmatmul.msk.f32.vlgmr.msra.gmra.mxu3 %vm501_vm7, %v924_v35 }
 0x151   : > { %1520 = vmatmul.msk.f32.gmra.mxu2 %vm501_vm7, %v925_v60 }
 0x158   : > { %1522 = vmatmul.msk.f32.gmra.mxu3 %vm501_vm7, %v925_v60 }
 0x186   : > { %v936_v38 = vpop.permute.xlu2 %935 }
 0x18e   : > { %v931_v12 = vpop.permute.xlu2 %930 }
 0x1cc   : > { %v961_v41 = vpop.f32.mrf.mxu2 }
 0x1cd   : > { %v2087_v24 = vadd.f32 %v961_v41, %v931_v12 }
 0x1cf   : > { %v2090_v54 = vmul.f32 0.70710677, %v2087_v24 }
 0x1d1   : > { %v998_v37 = vmul.f32 %v2090_v54, %v2090_v54 }
 0x1d3   : > { %v2094_v5 = vmin.f32 %v998_v37, 16.0  ;;  %v984_v55 = vpop.f32.mrf.mxu3 }
 0x1d4   : > { %v2096_v13 = vadd.f32 %v984_v55, %v931_v12  ;;  %v964_v39 = vpop.f32.mrf.mxu2 }
 0x1d5   : > { %v1000_v36 = vmul.f32 2.1237322e-06, %v2094_v5  ;;  %v2099_v17 = vadd.f32 %v964_v39, %v936_v38  ;;  %v1011_v3 = vmul.f32 3.8918573e-05, %v2094_v5 }
 0x1d6   : > { %v2102_v44 = vmul.f32 0.70710677, %v2096_v13 }
 0x1d7   : > { %v1001_v56 = vadd.f32 0.00028619796, %v1000_v36  ;;  %v2105_v18 = vmul.f32 0.70710677, %v2099_v17  ;;  %v1012_v47 = vadd.f32 0.001143296, %v1011_v3 }
 0x1d8   : > { %v1038_v45 = vmul.f32 %v2102_v44, %v2102_v44 }
 0x1d9   : > { %v1002_v49 = vmul.f32 %v1001_v56, %v2094_v5  ;;  %v1078_v53 = vmul.f32 %v2105_v18, %v2105_v18  ;;  %v1013_v4 = vmul.f32 %v1012_v47, %v2094_v5 }
 0x1da   : > { %v2112_v1 = vmin.f32 %v1038_v45, 16.0 }
 0x1db   : > { %v1003_v61 = vadd.f32 0.0036580483, %v1002_v49  ;;  %v2114_v40 = vmin.f32 %v1078_v53, 16.0  ;;  %v987_v15 = vpop.f32.mrf.mxu3  ;;  %v1014_v14 = vadd.f32 0.014752088, %v1013_v4 }
 0x1dc   : > { %v1040_v6 = vmul.f32 2.1237322e-06, %v2112_v1  ;;  %v2118_v7 = vadd.f32 %v987_v15, %v936_v38  ;;  %v1051_v29 = vmul.f32 3.8918573e-05, %v2112_v1 }
 0x1dd   : > { %v1080_v58 = vmul.f32 2.1237322e-06, %v2114_v40  ;;  %v1091_v52 = vmul.f32 3.8918573e-05, %v2114_v40  ;;  %v1004_v9 = vmul.f32 %v1003_v61, %v2094_v5  ;;  %v1015_v31 = vmul.f32 %v1014_v14, %v2094_v5 }
 0x1de   : > { %v1041_v23 = vadd.f32 0.00028619796, %v1040_v6  ;;  %v2124_v2 = vmul.f32 0.70710677, %v2118_v7  ;;  %v1052_v11 = vadd.f32 0.001143296, %v1051_v29 }
 0x1df   : > { %v1081_v20 = vadd.f32 0.00028619796, %v1080_v58  ;;  %v1092_v8 = vadd.f32 0.001143296, %v1091_v52  ;;  %v1005_v10 = vadd.f32 0.05243302, %v1004_v9 }
 0x1e0   : > { %v1042_v25 = vmul.f32 %v1041_v23, %v2112_v1  ;;  %v1118_v59 = vmul.f32 %v2124_v2, %v2124_v2  ;;  %v1053_v27 = vmul.f32 %v1052_v11, %v2112_v1  ;;  %v1016_v63 = vadd.f32 0.112945676, %v1015_v31 }
 0x1e1   : > { %v1082_v57 = vmul.f32 %v1081_v20, %v2114_v40  ;;  %v1093_v0 = vmul.f32 %v1092_v8, %v2114_v40  ;;  %v1006_v28 = vmul.f32 %v1005_v10, %v2094_v5 }
 0x1e2   : > { %v1043_v19 = vadd.f32 0.0036580483, %v1042_v25  ;;  %v2133_v26 = vmin.f32 %v1118_v59, 16.0  ;;  %v1054_v48 = vadd.f32 0.014752088, %v1053_v27  ;;  %v1017_v46 = vmul.f32 %v1016_v63, %v2094_v5 }
 0x1e3   : > { %v1083_v30 = vadd.f32 0.0036580483, %v1082_v57  ;;  %v1094_v42 = vadd.f32 0.014752088, %v1093_v0  ;;  %v1007_v53 = vadd.f32 0.18741608, %v1006_v28 }
 0x1e4   : > { %v1120_v16 = vmul.f32 2.1237322e-06, %v2133_v26  ;;  %v1131_v62 = vmul.f32 3.8918573e-05, %v2133_v26  ;;  %v1044_v43 = vmul.f32 %v1043_v19, %v2112_v1  ;;  %v1055_v35 = vmul.f32 %v1054_v48, %v2112_v1 }
 0x1e5   : > { %v1084_v21 = vmul.f32 %v1083_v30, %v2114_v40  ;;  %v1095_v34 = vmul.f32 %v1094_v42, %v2114_v40  ;;  %v1018_v41 = vadd.f32 0.4994258, %v1017_v46  ;;  %v1008_v20 = vmul.f32 %v1007_v53, %v2094_v5 }
 0x1e6   : > { %v1121_v32 = vadd.f32 0.00028619796, %v1120_v16  ;;  %v1132_v33 = vadd.f32 0.001143296, %v1131_v62  ;;  %v1056_v38 = vadd.f32 0.112945676, %v1055_v35 }
 0x1e7   : > { %v1085_v51 = vadd.f32 0.05243302, %v1084_v21  ;;  %v1096_v22 = vadd.f32 0.112945676, %v1095_v34  ;;  %v1045_v37 = vadd.f32 0.05243302, %v1044_v43  ;;  %v1019_v49 = vmul.f32 %v1018_v41, %v2094_v5 }
 0x1e8   : > { %v1122_v50 = vmul.f32 %v1121_v32, %v2133_v26  ;;  %v1133_v60 = vmul.f32 %v1132_v33, %v2133_v26  ;;  %v1057_v36 = vmul.f32 %v1056_v38, %v2112_v1  ;;  %v1009_v0 = vadd.f32 1.1283791, %v1008_v20 }
 0x1e9   : > { %v1097_v12 = vmul.f32 %v1096_v22, %v2114_v40  ;;  %v1086_v56 = vmul.f32 %v1085_v51, %v2114_v40  ;;  %v1020_v29 = vadd.f32 1.0, %v1019_v49  ;;  %v1046_v58 = vmul.f32 %v1045_v37, %v2112_v1 }
 0x1ea   : > { %v1123_v55 = vadd.f32 0.0036580483, %v1122_v50  ;;  %v1134_v39 = vadd.f32 0.014752088, %v1133_v60  ;;  %v1058_v15 = vadd.f32 0.4994258, %v1057_v36  ;;  %v1010_v16 = vmul.f32 %v1009_v0, %v2090_v54 }
 0x1eb   : > { %v1098_v45 = vadd.f32 0.4994258, %v1097_v12  ;;  %v1087_v47 = vadd.f32 0.18741608, %v1086_v56  ;;  %1588 = vrcp.f32 %v1020_v29  ;;  %v1047_v25 = vadd.f32 0.18741608, %v1046_v58 }
 0x1ec   : > { %v1135_v61 = vmul.f32 %v1134_v39, %v2133_v26  ;;  %v1124_v3 = vmul.f32 %v1123_v55, %v2133_v26  ;;  %v1059_v9 = vmul.f32 %v1058_v15, %v2112_v1  ;;  %v1030_v62 = vand.u32 2147483647, %v1020_v29 }
 0x1ed   : > { %v1099_v6 = vmul.f32 %v1098_v45, %v2114_v40  ;;  %v1088_v11 = vmul.f32 %v1087_v47, %v2114_v40  ;;  %v1048_v5 = vmul.f32 %v1047_v25, %v2112_v1  ;;  %vm1026_vm7 = vweird.f32 %v1020_v29 }
 0x1ee   : > { %v1136_v52 = vadd.f32 0.112945676, %v1135_v61  ;;  %v1125_v4 = vadd.f32 0.05243302, %v1124_v3  ;;  %v2159_v57 = vadd.f32 1.0, %v1059_v9  ;;  %v1032_v33 = vand.u32 2147483648, %v1020_v29 }
 0x1ef   : > { %v1100_v23 = vadd.f32 1.0, %v1099_v6  ;;  %v1089_v31 = vadd.f32 1.1283791, %v1088_v11  ;;  %v1049_v43 = vadd.f32 1.1283791, %v1048_v5  ;;  %vm2170_vm13 = vcmp.eq.f32.partialorder %v1030_v62, 8.507059e+37 }
 0x1f0   : > { %v1137_v8 = vmul.f32 %v1136_v52, %v2133_v26  ;;  %v1126_v27 = vmul.f32 %v1125_v4, %v2133_v26  ;;  %v1033_v41 = vor.u32 1.1754944e-38, %v1032_v33  ;;  %vm1066_vm0 = vweird.f32 %v2159_v57 }
 0x1f1   : > { %1590 = vrcp.f32 %v1100_v23  ;;  %v1589_v19 = vpop.eup %1588  ;;  %v1110_v21 = vand.u32 2147483647, %v1100_v23  ;;  %v1112_v34 = vand.u32 2147483648, %v1100_v23  ;;  %v1090_v35 = vmul.f32 %v1089_v31, %v2105_v18 }
 0x1f2   : > { %v1138_v59 = vadd.f32 0.4994258, %v1137_v8  ;;  %1592 = vrcp.f32 %v2159_v57  ;;  %v1022_v30 = vmul.f32 %v1589_v19, %v1020_v29  ;;  %v1127_v48 = vadd.f32 0.18741608, %v1126_v27 }
 0x1f3   : > { %vm1106_vm10 = vweird.f32 %v1100_v23  ;;  %vm1027_vm11 = vweird.f32 %v1589_v19  ;;  %vm2176_vm14 = vcmp.eq.f32.partialorder %v1110_v21, 8.507059e+37  ;;  %v1113_v60 = vor.u32 1.1754944e-38, %v1112_v34 }
 0x1f4   : > { %v1139_v14 = vmul.f32 %v1138_v59, %v2133_v26  ;;  %v1023_v63 = vsub.f32 1.0, %v1022_v30  ;;  %v1128_v28 = vmul.f32 %v1127_v48, %v2133_v26  ;;  %vm1028_vm15 = vmor %vm1026_vm7, %vm1027_vm11  ;;  %v1070_v26 = vand.u32 2147483647, %v2159_v57 }
 0x1f5   : > { %v1072_v36 = vand.u32 2147483648, %v2159_v57  ;;  %v1050_v20 = vmul.f32 %v1049_v43, %v2102_v44  ;;  %v992_v25 = vmul.f32 0.5, %v2099_v17  ;;  %v990_v44 = vmul.f32 0.5, %v2087_v24 }
 0x1f6   : > { %v2165_v10 = vadd.f32 1.0, %v1139_v14  ;;  %v1024_v51 = vmul.f32 %v1589_v19, %v1023_v63  ;;  %v1129_v53 = vadd.f32 1.1283791, %v1128_v28  ;;  %vm1071_vm5 = vcmp.eq.f32.partialorder %v1070_v26, 8.507059e+37  ;;  %v1171_v63 = vpop.permute.xlu0 %1170 }
 0x1f7   : > { %v1591_v42 = vpop.eup %1590  ;;  %v1073_v9 = vor.u32 1.1754944e-38, %v1072_v36  ;;  %vm1173_vm7 = vcmask 130048   ;;  %v993_v62 = vmul.f32 0.5, %v2118_v7  ;;  %v991_v24 = vmul.f32 0.5, %v2096_v13 }
 0x1f8   : > { %v1102_v40 = vmul.f32 %v1591_v42, %v1100_v23  ;;  %1594 = vrcp.f32 %v2165_v10  ;;  %v1593_v1 = vpop.eup %1592  ;;  %vm1107_vm12 = vweird.f32 %v1591_v42  ;;  %v1025_v38 = vadd.f32 %v1589_v19, %v1024_v51 }
 0x1f9   : > { %v1062_v46 = vmul.f32 %v1593_v1, %v2159_v57  ;;  %vm1108_vm1 = vmor %vm1106_vm10, %vm1107_vm12  ;;  %vm1067_vm2 = vweird.f32 %v1593_v1  ;;  %v1150_v29 = vand.u32 2147483647, %v2165_v10  ;;  %v1152_v58 = vand.u32 2147483648, %v2165_v10 }
 0x1fa   : > { %v1103_v32 = vsub.f32 1.0, %v1102_v40  ;;  %v1029_v39 = vsel %vm1028_vm15, %v1589_v19, %v1025_v38  ;;  %vm1068_vm4 = vmor %vm1066_vm0, %vm1067_vm2  ;;  %vm1146_vm6 = vweird.f32 %v2165_v10  ;;  %v1130_v57 = vmul.f32 %v1129_v53, %v2124_v2 }
 0x1fb   : > { %v1063_v37 = vsub.f32 1.0, %v1062_v46  ;;  %v1034_v45 = vsel %vm2170_vm13, %v1033_v41, %v1029_v39  ;;  %v1153_v14 = vor.u32 1.1754944e-38, %v1152_v58  ;;  %vm1151_vm9 = vcmp.eq.f32.partialorder %v1150_v29, 8.507059e+37 }
 0x1fc   : > { %v1104_v22 = vmul.f32 %v1591_v42, %v1103_v32  ;;  %v1035_v3 = vmul.f32 %v1034_v45, %v1010_v16  ;;  %vm1312_vm2 = vcmask 64512  }
 0x1fd   : > { %v1064_v49 = vmul.f32 %v1593_v1, %v1063_v37 }
 0x1fe   : > { %v1595_v18 = vpop.eup %1594  ;;  %v1105_v12 = vadd.f32 %v1591_v42, %v1104_v22  ;;  %v1523_v23 = vclamps-f32 %v1035_v3, 1.0 }
 0x1ff   : > { %v1142_v55 = vmul.f32 %v1595_v18, %v2165_v10  ;;  %v1065_v52 = vadd.f32 %v1593_v1, %v1064_v49  ;;  %vm1147_vm3 = vweird.f32 %v1595_v18  ;;  %v1166_v10 = vld [vmem:[%s2238_s5] sm:$0xff] }
 0x200   : > { %v1109_v56 = vsel %vm1108_vm1, %v1591_v42, %v1105_v12  ;;  %vm1148_vm8 = vmor %vm1146_vm6, %vm1147_vm3  ;;  %v1158_v19 = vadd.f32 1.0, %v1523_v23  ;;  %vm1403_vm3 = vcmask 1041408  }
 0x201   : > { %v1114_v61 = vsel %vm2176_vm14, %v1113_v60, %v1109_v56  ;;  %v1143_v15 = vsub.f32 1.0, %v1142_v55  ;;  %v1069_v4 = vsel %vm1068_vm4, %v1593_v1, %v1065_v52 }
 0x202   : > { %v1115_v6 = vmul.f32 %v1114_v61, %v1090_v35  ;;  %v1074_v11 = vsel %vm1071_vm5, %v1073_v9, %v1069_v4  ;;  %v1162_v17 = vmul.f32 %v1158_v19, %v990_v44 }
 0x203   : > { %v1144_v47 = vmul.f32 %v1595_v18, %v1143_v15  ;;  %v1075_v27 = vmul.f32 %v1074_v11, %v1050_v20 }
 0x204   : > { %v1525_v8 = vclamps-f32 %v1115_v6, 1.0 }
 0x205   : > { %v1145_v59 = vadd.f32 %v1595_v18, %v1144_v47  ;;  %v1524_v16 = vclamps-f32 %v1075_v27, 1.0 }
 0x206   : > { %v1160_v0 = vadd.f32 1.0, %v1525_v8 }
 0x207   : > { %v1149_v5 = vsel %vm1148_vm8, %v1595_v18, %v1145_v59  ;;  %v1159_v48 = vadd.f32 1.0, %v1524_v16 }
 0x208   : > { %v1164_v30 = vmul.f32 %v1160_v0, %v992_v25  ;;  %v1154_v42 = vsel %vm1151_vm9, %v1153_v14, %v1149_v5 }
 0x209   : > { %v1155_v31 = vmul.f32 %v1154_v42, %v1130_v57  ;;  %v1163_v34 = vmul.f32 %v1159_v48, %v991_v24 }
 0x20a   : > { %1191 = vmatpush.msrb.mxu2 %v1164_v30 }
 0x20b   : > { %v1526_v40 = vclamps-f32 %v1155_v31, 1.0 }
 0x20c   : > { %1192 = vmatpush.msrb.mxu2 %v1162_v17 }
 0x20d   : > { %v1161_v2 = vadd.f32 1.0, %v1526_v40  ;;  %1527 = vmatmul.msk.f32.vlgmr.msrb.gmra.mxu2 %vm1173_vm7, %v1166_v10 }
 0x20f   : > { %v1165_v21 = vmul.f32 %v1161_v2, %v993_v62 }
 0x211   : > { %1211 = vmatpush.msrb.mxu3 %v1165_v21 }
 0x213   : > { %1212 = vmatpush.msrb.mxu3 %v1163_v34 }
 0x214   : > { %1528 = vmatmul.msk.f32.vlgmr.msrb.gmra.mxu3 %vm1173_vm7, %v1166_v10 }
 0x290   : > { %v1194_v43 = vpop.f32.mrf.mxu2 }
 0x291   : > { %v2204_v32 = vadd.f32 %v1194_v43, %v1171_v63 }
 0x293   : > { %v1219_v33 = vmul.f32 0.70710677, %v2204_v32 }
 0x295   : > { %v1221_v1 = vmul.f32 %v1219_v33, %v1219_v33 }
 0x297   : > { %v1222_v35 = vmin.f32 %v1221_v1, 16.0  ;;  %v1214_v51 = vpop.f32.mrf.mxu3 }
 0x298   : > { %v2207_v7 = vadd.f32 %v1214_v51, %v1171_v63 }
 0x299   : > { %v1223_v22 = vmul.f32 2.1237322e-06, %v1222_v35  ;;  %v1234_v54 = vmul.f32 3.8918573e-05, %v1222_v35 }
 0x29a   : > { %v2210_v13 = vmul.f32 0.70710677, %v2207_v7 }
 0x29b   : > { %v1224_v46 = vadd.f32 0.00028619796, %v1223_v22  ;;  %v1235_v28 = vadd.f32 0.001143296, %v1234_v54 }
 0x29c   : > { %v1261_v50 = vmul.f32 %v2210_v13, %v2210_v13 }
 0x29d   : > { %v1225_v60 = vmul.f32 %v1224_v46, %v1222_v35  ;;  %v1236_v38 = vmul.f32 %v1235_v28, %v1222_v35  ;;  %v1217_v46 = vmul.f32 0.5, %v2204_v32  ;;  %v1218_v32 = vmul.f32 0.5, %v2207_v7 }
 0x29e   : > { %v1262_v18 = vmin.f32 %v1261_v50, 16.0 }
 0x29f   : > { %v1237_v12 = vadd.f32 0.014752088, %v1236_v38  ;;  %v1226_v41 = vadd.f32 0.0036580483, %v1225_v60 }
 0x2a0   : > { %v1263_v37 = vmul.f32 2.1237322e-06, %v1262_v18  ;;  %v1274_v55 = vmul.f32 3.8918573e-05, %v1262_v18 }
 0x2a1   : > { %v1238_v39 = vmul.f32 %v1237_v12, %v1222_v35  ;;  %v1227_v45 = vmul.f32 %v1226_v41, %v1222_v35  ;;  %v1305_v12 = vld [vmem:[%s2240_s7] sm:$0x3] }
 0x2a2   : > { %v1264_v26 = vadd.f32 0.00028619796, %v1263_v37  ;;  %v1275_v36 = vadd.f32 0.001143296, %v1274_v55 }
 0x2a3   : > { %v1239_v56 = vadd.f32 0.112945676, %v1238_v39  ;;  %v1228_v29 = vadd.f32 0.05243302, %v1227_v45 }
 0x2a4   : > { %v1265_v49 = vmul.f32 %v1264_v26, %v1262_v18  ;;  %v1276_v53 = vmul.f32 %v1275_v36, %v1262_v18 }
 0x2a5   : > { %v1240_v61 = vmul.f32 %v1239_v56, %v1222_v35  ;;  %v1229_v20 = vmul.f32 %v1228_v29, %v1222_v35 }
 0x2a6   : > { %v1277_v15 = vadd.f32 0.014752088, %v1276_v53  ;;  %v1266_v6 = vadd.f32 0.0036580483, %v1265_v49 }
 0x2a7   : > { %v1241_v3 = vadd.f32 0.4994258, %v1240_v61  ;;  %v1230_v59 = vadd.f32 0.18741608, %v1229_v20 }
 0x2a8   : > { %v1278_v58 = vmul.f32 %v1277_v15, %v1262_v18  ;;  %v1267_v9 = vmul.f32 %v1266_v6, %v1262_v18 }
 0x2a9   : > { %v1242_v52 = vmul.f32 %v1241_v3, %v1222_v35  ;;  %v1231_v27 = vmul.f32 %v1230_v59, %v1222_v35 }
 0x2aa   : > { %v1279_v47 = vadd.f32 0.112945676, %v1278_v58  ;;  %v1268_v25 = vadd.f32 0.05243302, %v1267_v9 }
 0x2ab   : > { %v1243_v23 = vadd.f32 1.0, %v1242_v52  ;;  %v1232_v42 = vadd.f32 1.1283791, %v1231_v27 }
 0x2ac   : > { %v1280_v8 = vmul.f32 %v1279_v47, %v1262_v18  ;;  %v1269_v19 = vmul.f32 %v1268_v25, %v1262_v18 }
 0x2ad   : > { %1596 = vrcp.f32 %v1243_v23  ;;  %v1255_v44 = vand.u32 2147483648, %v1243_v23  ;;  %v1253_v16 = vand.u32 2147483647, %v1243_v23  ;;  %vm1249_vm11 = vweird.f32 %v1243_v23 }
 0x2ae   : > { %v1281_v4 = vadd.f32 0.4994258, %v1280_v8  ;;  %v1270_v30 = vadd.f32 0.18741608, %v1269_v19  ;;  %v1233_v48 = vmul.f32 %v1232_v42, %v1219_v33 }
 0x2af   : > { %v1256_v40 = vor.u32 1.1754944e-38, %v1255_v44  ;;  %vm1254_vm13 = vcmp.eq.f32.partialorder %v1253_v16, 8.507059e+37 }
 0x2b0   : > { %v1282_v11 = vmul.f32 %v1281_v4, %v1262_v18  ;;  %v1271_v62 = vmul.f32 %v1270_v30, %v1262_v18 }
 0x2b2   : > { %v1283_v0 = vadd.f32 1.0, %v1282_v11  ;;  %v1272_v1 = vadd.f32 1.1283791, %v1271_v62 }
 0x2b3   : > { %v1597_v14 = vpop.eup %1596 }
 0x2b4   : > { %v1245_v57 = vmul.f32 %v1597_v14, %v1243_v23  ;;  %1598 = vrcp.f32 %v1283_v0  ;;  %vm1250_vm10 = vweird.f32 %v1597_v14  ;;  %v1295_v43 = vand.u32 2147483648, %v1283_v0 }
 0x2b5   : > { %vm1251_vm12 = vmor %vm1249_vm11, %vm1250_vm10  ;;  %v1293_v51 = vand.u32 2147483647, %v1283_v0  ;;  %vm1289_vm15 = vweird.f32 %v1283_v0  ;;  %v1273_v33 = vmul.f32 %v1272_v1, %v2210_v13  ;;  %v1310_v13 = vpop.permute.xlu1 %1309 }
 0x2b6   : > { %v1246_v5 = vsub.f32 1.0, %v1245_v57  ;;  %v1296_v50 = vor.u32 1.1754944e-38, %v1295_v43 }
 0x2b7   : > { %vm1294_vm1 = vcmp.eq.f32.partialorder %v1293_v51, 8.507059e+37 }
 0x2b8   : > { %v1247_v31 = vmul.f32 %v1597_v14, %v1246_v5 }
 0x2ba   : > { %v1599_v17 = vpop.eup %1598  ;;  %v1248_v10 = vadd.f32 %v1597_v14, %v1247_v31 }
 0x2bb   : > { %v1285_v2 = vmul.f32 %v1599_v17, %v1283_v0  ;;  %vm1290_vm14 = vweird.f32 %v1599_v17 }
 0x2bc   : > { %v1252_v24 = vsel %vm1251_vm12, %v1597_v14, %v1248_v10  ;;  %vm1291_vm0 = vmor %vm1289_vm15, %vm1290_vm14 }
 0x2bd   : > { %v1257_v21 = vsel %vm1254_vm13, %v1256_v40, %v1252_v24  ;;  %v1286_v34 = vsub.f32 1.0, %v1285_v2 }
 0x2be   : > { %v1258_v63 = vmul.f32 %v1257_v21, %v1233_v48 }
 0x2bf   : > { %v1287_v35 = vmul.f32 %v1599_v17, %v1286_v34 }
 0x2c0   : > { %v1529_v22 = vclamps-f32 %v1258_v63, 1.0 }
 0x2c1   : > { %v1288_v54 = vadd.f32 %v1599_v17, %v1287_v35 }
 0x2c2   : > { %v1301_v28 = vadd.f32 1.0, %v1529_v22 }
 0x2c3   : > { %v1292_v60 = vsel %vm1291_vm0, %v1599_v17, %v1288_v54 }
 0x2c4   : > { %v1303_v38 = vmul.f32 %v1301_v28, %v1217_v46  ;;  %v1297_v18 = vsel %vm1294_vm1, %v1296_v50, %v1292_v60 }
 0x2c5   : > { %v1298_v41 = vmul.f32 %v1297_v18, %v1273_v33 }
 0x2c6   : > { %1331 = vmatpush.msra.mxu2 %v1303_v38 }
 0x2c7   : > { %v1530_v37 = vclamps-f32 %v1298_v41, 1.0  ;;  %1531 = vmatmul.msk.f32.vlgmr.msra.gmra.mxu2 %vm1312_vm2, %v1305_v12 }
 0x2c9   : > { %v1302_v55 = vadd.f32 1.0, %v1530_v37 }
 0x2cb   : > { %v1304_v39 = vmul.f32 %v1302_v55, %v1218_v32 }
 0x2cd   : > { %1351 = vmatpush.msra.mxu3 %v1304_v39 }
 0x2ce   : > { %1532 = vmatmul.msk.f32.vlgmr.msra.gmra.mxu3 %vm1312_vm2, %v1305_v12 }
 0x34a   : > { %v1333_v26 = vpop.f32.mrf.mxu2 }
 0x34b   : > { %v1334_v36 = vadd.f32 %v1333_v26, %v1310_v13 }
 0x34d   : > { %v1358_v56 = vrot.slane %v1334_v36, 1 }
 0x34f   : > { %v1362_v45 = vmax.f32 %v1334_v36, %v1358_v56 }
 0x351   : > { %v1364_v49 = vsub.f32 %v1334_v36, %v1362_v45  ;;  %v1372_v53 = vrot.slane %v1362_v45, 7  ;;  %v1353_v61 = vpop.f32.mrf.mxu3 }
 0x352   : > { %v1354_v15 = vadd.f32 %v1353_v61, %v1310_v13 }
 0x353   : > { %v1376_v3 = vsub.f32 %v1334_v36, %v1372_v53  ;;  %v1366_v29 = vmul.f32 1.442695, %v1364_v49 }
 0x354   : > { %v1359_v6 = vrot.slane %v1354_v15, 1 }
 0x355   : > { %v1378_v58 = vmul.f32 1.442695, %v1376_v3 }
 0x356   : > { %v1363_v52 = vmax.f32 %v1354_v15, %v1359_v6 }
 0x357   : > { %1600 = vpow2.f32 %v1378_v58 }
 0x358   : > { %v1365_v7 = vsub.f32 %v1354_v15, %v1363_v52  ;;  %v1373_v47 = vrot.slane %v1363_v52, 7  ;;  %1602 = vpow2.f32 %v1366_v29 }
 0x35a   : > { %v1377_v23 = vsub.f32 %v1354_v15, %v1373_v47  ;;  %v1368_v9 = vmul.f32 1.442695, %v1365_v7 }
 0x35c   : > { %v1380_v20 = vmul.f32 1.442695, %v1377_v23 }
 0x35d   : > { %v1601_v8 = vpop.eup %1600 }
 0x35e   : > { %v1384_v4 = vrot.slane %v1601_v8, 1  ;;  %1604 = vpow2.f32 %v1380_v20  ;;  %v1603_v25 = vpop.eup %1602 }
 0x35f   : > { %1606 = vpow2.f32 %v1368_v9 }
 0x360   : > { %v1388_v59 = vadd.f32 %v1603_v25, %v1384_v4 }
 0x362   : > { %1608 = vlog2.f32 %v1388_v59 }
 0x364   : > { %v1605_v11 = vpop.eup %1604 }
 0x365   : > { %v1385_v0 = vrot.slane %v1605_v11, 1  ;;  %v1607_v14 = vpop.eup %1606 }
 0x367   : > { %v1389_v19 = vadd.f32 %v1607_v14, %v1385_v0 }
 0x368   : > { %v1609_v27 = vpop.eup %1608 }
 0x369   : > { %1610 = vlog2.f32 %v1389_v19  ;;  %v1391_v57 = vmul.f32 0.6931472, %v1609_v27 }
 0x36b   : > { %v1394_v44 = vadd.f32 %v1391_v57, %v1362_v45 }
 0x36d   : > { %v1396_v31 = vperm.slane %v1394_v44, 0 }
 0x36f   : > { %v1611_v5 = vpop.eup %1610  ;;  %v1398_v10 = vsub.f32 %v1334_v36, %v1396_v31 }
 0x370   : > { %v1393_v30 = vmul.f32 0.6931472, %v1611_v5 }
 0x372   : > { %v1395_v42 = vadd.f32 %v1393_v30, %v1363_v52 }
 0x374   : > { %v1397_v16 = vperm.slane %v1395_v42, 0 }
 0x376   : > { %v1399_v17 = vsub.f32 %v1354_v15, %v1397_v16 }
 0x378   : > { %v1402_v40 = vrot.slane %v1399_v17, 6 }
 0x37a   : > { %v1404_v62 = vsel %vm1403_vm3, %v1398_v10, %v1402_v40 }
 0x37b   : > { %1406 = vst [vmem:[%s370_s18] sm:$0xf] %v1404_v62 }
 0x37c PF: > { %s19_s11 = sadd.s32 1, %s1634_s11   ;;  %s2257_s30 = smov %s1630_s10 }
 0x37d   : > { %p16_p5 = scmp.ge.s32.totalorder %s19_s11, 4   ;;  %s2258_s10 = smov %s2260_s12 }
 0x37f   :  { %18 = sbr.rel (!%p16_p5) target bundleno = 2 (0x2), region = 86 }

</bundles_post_ra>
